<compile_context>
chip_gen: v7x
topology: tpu7x:2x2x1
jax: 0.10.0
libtpu: 0.0.40
codegen_flags: <defaults>
</compile_context>

<pallas_src>
import jax
import jax.numpy as jnp
from jax.experimental import pallas as pl
from jax.experimental.pallas import tpu as pltpu


def _round_up(x, m):
    return ((x + m - 1) // m) * m


def _cdiv(a, b):
    return -(-a // b)


def _make_ae_kernel(matmul_dtype):
    """Kernel closure: x_ref, 16 interleaved (W, b) refs, out_ref."""

    def kernel(x_ref, *refs):
        out_ref = refs[-1]
        p = refs[:-1]          # w_e1, b_e1, ..., w_xb, b_xb (already (in,out) / (1,out))

        def lin(h, w_r, b_r):
            # nn.Linear: h @ W^T + b.  Matmul inputs in bf16 (cast on the VPU,
            # hidden under the MXU/DMA), f32 accumulation, f32 bias-add.
            return jnp.dot(h.astype(matmul_dtype), w_r[...],
                           preferred_element_type=jnp.float32) + b_r[...]

        def relu(v):
            return jnp.maximum(v, 0.0)

        x = x_ref[...]                                  # f32 tile straight from HBM
        h1 = relu(lin(x, p[0], p[1]))
        h2 = relu(lin(h1, p[2], p[3]))
        h3 = relu(lin(h2, p[4], p[5]))
        z = lin(h3, p[6], p[7])
        d1 = relu(lin(z, p[8], p[9]))
        d2 = relu(lin(d1, p[10], p[11]))
        d3 = relu(lin(d2, p[12], p[13]))
        x_bar = lin(d3, p[14], p[15])

        # Direct static-slice stores into the lane-dense slab (no concat temp).
        off = 0
        for seg in (x_bar, h1, h2, h3, z):
            n = seg.shape[1]
            out_ref[:, off:off + n] = seg.astype(out_ref.dtype)
            off += n
        pad = out_ref.shape[1] - off
        if pad > 0:
            out_ref[:, off:] = jnp.zeros((out_ref.shape[0], pad), out_ref.dtype)

    return kernel


def init_linear_params(key, in_features, out_features):
    """Deterministic PyTorch-like init: U(-1/sqrt(fan_in), 1/sqrt(fan_in))."""
    kw, kb = jax.random.split(key)
    bound = 1.0 / jnp.sqrt(jnp.float32(in_features))
    w = jax.random.uniform(kw, (out_features, in_features), jnp.float32,
                           minval=-bound, maxval=bound)   # PyTorch layout (out, in)
    b = jax.random.uniform(kb, (out_features,), jnp.float32,
                           minval=-bound, maxval=bound)
    return w, b


def make_ae_params(key, n_enc_1, n_enc_2, n_enc_3,
                   n_dec_1, n_dec_2, n_dec_3, n_input, n_z):
    dims = [
        (n_input, n_enc_1),   # enc_1
        (n_enc_1, n_enc_2),   # enc_2
        (n_enc_2, n_enc_3),   # enc_3
        (n_enc_3, n_z),       # z_layer
        (n_z, n_dec_1),       # dec_1
        (n_dec_1, n_dec_2),   # dec_2
        (n_dec_2, n_dec_3),   # dec_3
        (n_dec_3, n_input),   # x_bar_layer
    ]
    keys = jax.random.split(key, len(dims))
    return [init_linear_params(k, fin, fout) for k, (fin, fout) in zip(keys, dims)]


def _choose_batch_tile(B, tm_max, even_tiles):
    """Balanced batch tiles: minimal padding, optionally an even tile count."""
    tm_cap = max(8, _round_up(min(tm_max, _round_up(B, 8)), 8))
    n_tiles = max(1, _cdiv(B, tm_cap))
    if even_tiles and n_tiles > 1 and n_tiles % 2:
        n_tiles += 1                      # even split across v7x's 2 TensorCores
    tm = _round_up(_cdiv(B, n_tiles), 8)
    b_pad = n_tiles * tm
    return tm, n_tiles, b_pad


def ae_forward(x, params, *, tm_max=1024, even_tiles=True,
               matmul_dtype=jnp.bfloat16, out_dtype=jnp.float32):
    """x: [B, n_input] float32; params: list of 8 (W(out,in), b(out,)) pairs.

    Returns (x_bar, enc_h1, enc_h2, enc_h3, z), all `out_dtype`.
    """
    B, n_input = x.shape
    n_enc_1 = params[0][0].shape[0]
    n_enc_2 = params[1][0].shape[0]
    n_enc_3 = params[2][0].shape[0]
    n_z = params[3][0].shape[0]

    # Output slab layout (lane-dense, padded to a multiple of 128 lanes).
    seg_sizes = [n_input, n_enc_1, n_enc_2, n_enc_3, n_z]   # x_bar, h1, h2, h3, z
    out_cols = sum(seg_sizes)
    out_pad = _round_up(out_cols, 128)

    # Balanced batch tiling (even tile count when >1 for v7x megacore).
    tm, n_tiles, b_pad = _choose_batch_tile(B, tm_max, even_tiles)

    # Keep x in f32; pad (zeros) only if the balanced tiling requires it.
    x_in = x if b_pad == B else jnp.pad(x, ((0, b_pad - B), (0, 0)))

    # Flatten params: weights transposed to (in, out) in matmul dtype,
    # biases reshaped to (1, out) in f32.  Constant index_map -> VMEM-resident.
    flat_args = [x_in]
    in_specs = [pl.BlockSpec((tm, n_input), lambda i: (i, 0))]
    for w, b in params:
        fout, fin = w.shape
        flat_args.append(jnp.asarray(w.T, matmul_dtype))
        flat_args.append(jnp.asarray(b, jnp.float32).reshape(1, fout))
        in_specs.append(pl.BlockSpec((fin, fout), lambda i: (0, 0)))
        in_specs.append(pl.BlockSpec((1, fout), lambda i: (0, 0)))
    out_spec = pl.BlockSpec((tm, out_pad), lambda i: (i, 0))

    # Cost estimate for XLA's scheduler.
    mm_isz = jnp.dtype(matmul_dtype).itemsize
    out_isz = jnp.dtype(out_dtype).itemsize
    flops = 2 * b_pad * sum(w.shape[0] * w.shape[1] for w, _ in params)
    param_bytes = sum(w.size * mm_isz + w.shape[0] * 4 for w, _ in params)
    bytes_accessed = (b_pad * n_input * 4          # x read (f32)
                      + param_bytes                # weights/biases (read once)
                      + b_pad * out_pad * out_isz)  # slab writeback
    cost = pl.CostEstimate(flops=flops, transcendentals=0,
                           bytes_accessed=bytes_accessed)

    # Estimated per-step VMEM footprint (default double-buffering on every
    # operand).  Only raise the scoped limit when we would exceed the smallest
    # default (16 MiB on v5e); at toy dims this stays None.
    max_width = max([n_input] + [w.shape[0] for w, _ in params])
    footprint = (2 * param_bytes
                 + 2 * tm * n_input * 4
                 + 2 * tm * out_pad * out_isz
                 + 4 * tm * max_width * 4)          # headroom for activations/temps
    cp_kwargs = dict(dimension_semantics=("parallel",))   # batch tiles across TCs
    if footprint > (16 << 20):
        cp_kwargs["vmem_limit_bytes"] = min(max(int(footprint * 1.5), 32 << 20),
                                            100 << 20)
    # TODO(synk): at realistic AE widths on v7x, additionally single-buffer the
    # constant weight blocks (pipeline_mode=pl.Buffered(1)) to halve their VMEM.

    out_slab = pl.pallas_call(
        _make_ae_kernel(matmul_dtype),
        out_shape=jax.ShapeDtypeStruct((b_pad, out_pad), out_dtype),
        grid=(n_tiles,),
        in_specs=in_specs,
        out_specs=out_spec,
        compiler_params=pltpu.CompilerParams(**cp_kwargs),
        cost_estimate=cost,
    )(*flat_args)

    # Split the lane-dense slab back into the five module outputs (XLA fuses
    # these slices into consumers; returning the slab+offsets is also fine).
    offs = [0]
    for s in seg_sizes:
        offs.append(offs[-1] + s)
    x_bar = out_slab[:B, offs[0]:offs[1]]
    h1 = out_slab[:B, offs[1]:offs[2]]
    h2 = out_slab[:B, offs[2]:offs[3]]
    h3 = out_slab[:B, offs[3]:offs[4]]
    z = out_slab[:B, offs[4]:offs[5]]
    return x_bar, h1, h2, h3, z


def ae_forward_ref(x, params, matmul_dtype=jnp.bfloat16):
    """Pure-JAX reference mirroring the PyTorch module (and kernel numerics:
    bf16 matmul inputs, f32 accumulation, f32 bias/ReLU)."""
    def lin(h, w, b):
        return jnp.dot(h.astype(matmul_dtype), w.T.astype(matmul_dtype),
                       preferred_element_type=jnp.float32) + b.astype(jnp.float32)

    h1 = jax.nn.relu(lin(x, *params[0]))
    h2 = jax.nn.relu(lin(h1, *params[1]))
    h3 = jax.nn.relu(lin(h2, *params[2]))
    z = lin(h3, *params[3])
    d1 = jax.nn.relu(lin(z, *params[4]))
    d2 = jax.nn.relu(lin(d1, *params[5]))
    d3 = jax.nn.relu(lin(d2, *params[6]))
    x_bar = lin(d3, *params[7])
    return x_bar, h1, h2, h3, z


if __name__ == "__main__":
    # Small AE config consistent with the module's 8 Linear layers.
    n_input, n_z = 64, 8
    n_enc_1, n_enc_2, n_enc_3 = 32, 32, 64
    n_dec_1, n_dec_2, n_dec_3 = 64, 32, 32
    B = 600

    key = jax.random.PRNGKey(0)
    k_params, k_x = jax.random.split(key)
    params = make_ae_params(k_params, n_enc_1, n_enc_2, n_enc_3,
                            n_dec_1, n_dec_2, n_dec_3, n_input, n_z)
    x = jax.random.normal(k_x, (B, n_input), jnp.float32)

    refs = ae_forward_ref(x, params)
    names = ("x_bar", "enc_h1", "enc_h2", "enc_h3", "z")

    # Path 1: multi-tile grid (tm_max=256 -> 4 balanced tiles of 152 rows,
    #         only 8 padded rows, even split for v7x).
    outs_multi = jax.block_until_ready(ae_forward(x, params, tm_max=256))
    # Path 2: default (tm_max=1024 -> single 600-row tile, zero padding).
    outs_single = jax.block_until_ready(ae_forward(x, params))

    for outs in (outs_multi, outs_single):
        for name, o, r in zip(names, outs, refs):
            assert o.shape == r.shape and o.dtype == r.dtype, name
            assert jnp.allclose(o, r, atol=2e-3, rtol=2e-3), \
                f"mismatch vs reference: {name}"

    print("KERNEL_OK")
</pallas_src>

<mosaic_0001>
module attributes {stable_mosaic.version = 11 : i64} {
  func.func @kernel(%arg0: i32, %arg1: memref<152x64xf32, #tpu.memory_space<vmem>>, %arg2: memref<64x32xbf16, #tpu.memory_space<vmem>>, %arg3: memref<1x32xf32, #tpu.memory_space<vmem>>, %arg4: memref<32x32xbf16, #tpu.memory_space<vmem>>, %arg5: memref<1x32xf32, #tpu.memory_space<vmem>>, %arg6: memref<32x64xbf16, #tpu.memory_space<vmem>>, %arg7: memref<1x64xf32, #tpu.memory_space<vmem>>, %arg8: memref<64x8xbf16, #tpu.memory_space<vmem>>, %arg9: memref<1x8xf32, #tpu.memory_space<vmem>>, %arg10: memref<8x64xbf16, #tpu.memory_space<vmem>>, %arg11: memref<1x64xf32, #tpu.memory_space<vmem>>, %arg12: memref<64x32xbf16, #tpu.memory_space<vmem>>, %arg13: memref<1x32xf32, #tpu.memory_space<vmem>>, %arg14: memref<32x32xbf16, #tpu.memory_space<vmem>>, %arg15: memref<1x32xf32, #tpu.memory_space<vmem>>, %arg16: memref<32x64xbf16, #tpu.memory_space<vmem>>, %arg17: memref<1x64xf32, #tpu.memory_space<vmem>>, %arg18: memref<152x256xf32, #tpu.memory_space<vmem>>) attributes {dimension_semantics = [#tpu.dimension_semantics<parallel>], iteration_bounds = array<i64: 4>, scalar_prefetch = 0 : i64, scratch_operands = 0 : i64, tpu.core_type = #tpu.core_type<tc>, window_params = [{transform_indices = @transform_0, window_bounds = array<i64: 152, 64>}, {pipeline_mode = #tpu.pipeline_mode<synchronous>, transform_indices = @transform_1, window_bounds = array<i64: 64, 32>}, {pipeline_mode = #tpu.pipeline_mode<synchronous>, transform_indices = @transform_2, window_bounds = array<i64: 1, 32>}, {pipeline_mode = #tpu.pipeline_mode<synchronous>, transform_indices = @transform_3, window_bounds = array<i64: 32, 32>}, {pipeline_mode = #tpu.pipeline_mode<synchronous>, transform_indices = @transform_4, window_bounds = array<i64: 1, 32>}, {pipeline_mode = #tpu.pipeline_mode<synchronous>, transform_indices = @transform_5, window_bounds = array<i64: 32, 64>}, {pipeline_mode = #tpu.pipeline_mode<synchronous>, transform_indices = @transform_6, window_bounds = array<i64: 1, 64>}, {pipeline_mode = #tpu.pipeline_mode<synchronous>, transform_indices = @transform_7, window_bounds = array<i64: 64, 8>}, {pipeline_mode = #tpu.pipeline_mode<synchronous>, transform_indices = @transform_8, window_bounds = array<i64: 1, 8>}, {pipeline_mode = #tpu.pipeline_mode<synchronous>, transform_indices = @transform_9, window_bounds = array<i64: 8, 64>}, {pipeline_mode = #tpu.pipeline_mode<synchronous>, transform_indices = @transform_10, window_bounds = array<i64: 1, 64>}, {pipeline_mode = #tpu.pipeline_mode<synchronous>, transform_indices = @transform_11, window_bounds = array<i64: 64, 32>}, {pipeline_mode = #tpu.pipeline_mode<synchronous>, transform_indices = @transform_12, window_bounds = array<i64: 1, 32>}, {pipeline_mode = #tpu.pipeline_mode<synchronous>, transform_indices = @transform_13, window_bounds = array<i64: 32, 32>}, {pipeline_mode = #tpu.pipeline_mode<synchronous>, transform_indices = @transform_14, window_bounds = array<i64: 1, 32>}, {pipeline_mode = #tpu.pipeline_mode<synchronous>, transform_indices = @transform_15, window_bounds = array<i64: 32, 64>}, {pipeline_mode = #tpu.pipeline_mode<synchronous>, transform_indices = @transform_16, window_bounds = array<i64: 1, 64>}, {transform_indices = @transform_17, window_bounds = array<i64: 152, 256>}]} {
    %c0 = arith.constant 0 : index
    %c0_0 = arith.constant 0 : index
    %0 = vector.load %arg1[%c0, %c0_0] : memref<152x64xf32, #tpu.memory_space<vmem>>, vector<152x64xf32>
    %1 = arith.truncf %0 : vector<152x64xf32> to vector<152x64xbf16>
    %c0_1 = arith.constant 0 : index
    %c0_2 = arith.constant 0 : index
    %2 = vector.load %arg2[%c0_1, %c0_2] : memref<64x32xbf16, #tpu.memory_space<vmem>>, vector<64x32xbf16>
    %cst = arith.constant dense<0.000000e+00> : vector<152x32xf32>
    %3 = tpu.matmul %1, %2, %cst {dimension_numbers = #tpu.dot_dimension_numbers<[1], [0], [0], [1], [0, 0, 1, 1], [], []>} : vector<152x64xbf16>, vector<64x32xbf16>, vector<152x32xf32> -> vector<152x32xf32>
    %c0_3 = arith.constant 0 : index
    %c0_4 = arith.constant 0 : index
    %4 = vector.load %arg3[%c0_3, %c0_4] : memref<1x32xf32, #tpu.memory_space<vmem>>, vector<1x32xf32>
    %5 = vector.broadcast %4 : vector<1x32xf32> to vector<152x32xf32>
    %6 = arith.addf %3, %5 : vector<152x32xf32>
    %cst_5 = arith.constant 0.000000e+00 : f32
    %7 = vector.broadcast %cst_5 : f32 to vector<152x32xf32>
    %8 = arith.maximumf %6, %7 : vector<152x32xf32>
    %9 = arith.truncf %8 : vector<152x32xf32> to vector<152x32xbf16>
    %c0_6 = arith.constant 0 : index
    %c0_7 = arith.constant 0 : index
    %10 = vector.load %arg4[%c0_6, %c0_7] : memref<32x32xbf16, #tpu.memory_space<vmem>>, vector<32x32xbf16>
    %cst_8 = arith.constant dense<0.000000e+00> : vector<152x32xf32>
    %11 = tpu.matmul %9, %10, %cst_8 {dimension_numbers = #tpu.dot_dimension_numbers<[1], [0], [0], [1], [0, 0, 1, 1], [], []>} : vector<152x32xbf16>, vector<32x32xbf16>, vector<152x32xf32> -> vector<152x32xf32>
    %c0_9 = arith.constant 0 : index
    %c0_10 = arith.constant 0 : index
    %12 = vector.load %arg5[%c0_9, %c0_10] : memref<1x32xf32, #tpu.memory_space<vmem>>, vector<1x32xf32>
    %13 = vector.broadcast %12 : vector<1x32xf32> to vector<152x32xf32>
    %14 = arith.addf %11, %13 : vector<152x32xf32>
    %cst_11 = arith.constant 0.000000e+00 : f32
    %15 = vector.broadcast %cst_11 : f32 to vector<152x32xf32>
    %16 = arith.maximumf %14, %15 : vector<152x32xf32>
    %17 = arith.truncf %16 : vector<152x32xf32> to vector<152x32xbf16>
    %c0_12 = arith.constant 0 : index
    %c0_13 = arith.constant 0 : index
    %18 = vector.load %arg6[%c0_12, %c0_13] : memref<32x64xbf16, #tpu.memory_space<vmem>>, vector<32x64xbf16>
    %cst_14 = arith.constant dense<0.000000e+00> : vector<152x64xf32>
    %19 = tpu.matmul %17, %18, %cst_14 {dimension_numbers = #tpu.dot_dimension_numbers<[1], [0], [0], [1], [0, 0, 1, 1], [], []>} : vector<152x32xbf16>, vector<32x64xbf16>, vector<152x64xf32> -> vector<152x64xf32>
    %c0_15 = arith.constant 0 : index
    %c0_16 = arith.constant 0 : index
    %20 = vector.load %arg7[%c0_15, %c0_16] : memref<1x64xf32, #tpu.memory_space<vmem>>, vector<1x64xf32>
    %21 = vector.broadcast %20 : vector<1x64xf32> to vector<152x64xf32>
    %22 = arith.addf %19, %21 : vector<152x64xf32>
    %cst_17 = arith.constant 0.000000e+00 : f32
    %23 = vector.broadcast %cst_17 : f32 to vector<152x64xf32>
    %24 = arith.maximumf %22, %23 : vector<152x64xf32>
    %25 = arith.truncf %24 : vector<152x64xf32> to vector<152x64xbf16>
    %c0_18 = arith.constant 0 : index
    %c0_19 = arith.constant 0 : index
    %26 = vector.load %arg8[%c0_18, %c0_19] : memref<64x8xbf16, #tpu.memory_space<vmem>>, vector<64x8xbf16>
    %cst_20 = arith.constant dense<0.000000e+00> : vector<152x8xf32>
    %27 = tpu.matmul %25, %26, %cst_20 {dimension_numbers = #tpu.dot_dimension_numbers<[1], [0], [0], [1], [0, 0, 1, 1], [], []>} : vector<152x64xbf16>, vector<64x8xbf16>, vector<152x8xf32> -> vector<152x8xf32>
    %c0_21 = arith.constant 0 : index
    %c0_22 = arith.constant 0 : index
    %28 = vector.load %arg9[%c0_21, %c0_22] : memref<1x8xf32, #tpu.memory_space<vmem>>, vector<1x8xf32>
    %29 = vector.broadcast %28 : vector<1x8xf32> to vector<152x8xf32>
    %30 = arith.addf %27, %29 : vector<152x8xf32>
    %31 = arith.truncf %30 : vector<152x8xf32> to vector<152x8xbf16>
    %c0_23 = arith.constant 0 : index
    %c0_24 = arith.constant 0 : index
    %32 = vector.load %arg10[%c0_23, %c0_24] : memref<8x64xbf16, #tpu.memory_space<vmem>>, vector<8x64xbf16>
    %cst_25 = arith.constant dense<0.000000e+00> : vector<152x64xf32>
    %33 = tpu.matmul %31, %32, %cst_25 {dimension_numbers = #tpu.dot_dimension_numbers<[1], [0], [0], [1], [0, 0, 1, 1], [], []>} : vector<152x8xbf16>, vector<8x64xbf16>, vector<152x64xf32> -> vector<152x64xf32>
    %c0_26 = arith.constant 0 : index
    %c0_27 = arith.constant 0 : index
    %34 = vector.load %arg11[%c0_26, %c0_27] : memref<1x64xf32, #tpu.memory_space<vmem>>, vector<1x64xf32>
    %35 = vector.broadcast %34 : vector<1x64xf32> to vector<152x64xf32>
    %36 = arith.addf %33, %35 : vector<152x64xf32>
    %cst_28 = arith.constant 0.000000e+00 : f32
    %37 = vector.broadcast %cst_28 : f32 to vector<152x64xf32>
    %38 = arith.maximumf %36, %37 : vector<152x64xf32>
    %39 = arith.truncf %38 : vector<152x64xf32> to vector<152x64xbf16>
    %c0_29 = arith.constant 0 : index
    %c0_30 = arith.constant 0 : index
    %40 = vector.load %arg12[%c0_29, %c0_30] : memref<64x32xbf16, #tpu.memory_space<vmem>>, vector<64x32xbf16>
    %cst_31 = arith.constant dense<0.000000e+00> : vector<152x32xf32>
    %41 = tpu.matmul %39, %40, %cst_31 {dimension_numbers = #tpu.dot_dimension_numbers<[1], [0], [0], [1], [0, 0, 1, 1], [], []>} : vector<152x64xbf16>, vector<64x32xbf16>, vector<152x32xf32> -> vector<152x32xf32>
    %c0_32 = arith.constant 0 : index
    %c0_33 = arith.constant 0 : index
    %42 = vector.load %arg13[%c0_32, %c0_33] : memref<1x32xf32, #tpu.memory_space<vmem>>, vector<1x32xf32>
    %43 = vector.broadcast %42 : vector<1x32xf32> to vector<152x32xf32>
    %44 = arith.addf %41, %43 : vector<152x32xf32>
    %cst_34 = arith.constant 0.000000e+00 : f32
    %45 = vector.broadcast %cst_34 : f32 to vector<152x32xf32>
    %46 = arith.maximumf %44, %45 : vector<152x32xf32>
    %47 = arith.truncf %46 : vector<152x32xf32> to vector<152x32xbf16>
    %c0_35 = arith.constant 0 : index
    %c0_36 = arith.constant 0 : index
    %48 = vector.load %arg14[%c0_35, %c0_36] : memref<32x32xbf16, #tpu.memory_space<vmem>>, vector<32x32xbf16>
    %cst_37 = arith.constant dense<0.000000e+00> : vector<152x32xf32>
    %49 = tpu.matmul %47, %48, %cst_37 {dimension_numbers = #tpu.dot_dimension_numbers<[1], [0], [0], [1], [0, 0, 1, 1], [], []>} : vector<152x32xbf16>, vector<32x32xbf16>, vector<152x32xf32> -> vector<152x32xf32>
    %c0_38 = arith.constant 0 : index
    %c0_39 = arith.constant 0 : index
    %50 = vector.load %arg15[%c0_38, %c0_39] : memref<1x32xf32, #tpu.memory_space<vmem>>, vector<1x32xf32>
    %51 = vector.broadcast %50 : vector<1x32xf32> to vector<152x32xf32>
    %52 = arith.addf %49, %51 : vector<152x32xf32>
    %cst_40 = arith.constant 0.000000e+00 : f32
    %53 = vector.broadcast %cst_40 : f32 to vector<152x32xf32>
    %54 = arith.maximumf %52, %53 : vector<152x32xf32>
    %55 = arith.truncf %54 : vector<152x32xf32> to vector<152x32xbf16>
    %c0_41 = arith.constant 0 : index
    %c0_42 = arith.constant 0 : index
    %56 = vector.load %arg16[%c0_41, %c0_42] : memref<32x64xbf16, #tpu.memory_space<vmem>>, vector<32x64xbf16>
    %cst_43 = arith.constant dense<0.000000e+00> : vector<152x64xf32>
    %57 = tpu.matmul %55, %56, %cst_43 {dimension_numbers = #tpu.dot_dimension_numbers<[1], [0], [0], [1], [0, 0, 1, 1], [], []>} : vector<152x32xbf16>, vector<32x64xbf16>, vector<152x64xf32> -> vector<152x64xf32>
    %c0_44 = arith.constant 0 : index
    %c0_45 = arith.constant 0 : index
    %58 = vector.load %arg17[%c0_44, %c0_45] : memref<1x64xf32, #tpu.memory_space<vmem>>, vector<1x64xf32>
    %59 = vector.broadcast %58 : vector<1x64xf32> to vector<152x64xf32>
    %60 = arith.addf %57, %59 : vector<152x64xf32>
    %c0_46 = arith.constant 0 : index
    %c0_47 = arith.constant 0 : index
    %61 = vector.load %arg18[%c0_46, %c0_47] : memref<152x256xf32, #tpu.memory_space<vmem>>, vector<152x64xf32>
    tpu.vector_store %arg18[%c0_46, %c0_47], %60 {strides = array<i32>} : memref<152x256xf32, #tpu.memory_space<vmem>>, vector<152x64xf32>,
    %c0_48 = arith.constant 0 : index
    %c64 = arith.constant 64 : index
    %62 = vector.load %arg18[%c0_48, %c64] : memref<152x256xf32, #tpu.memory_space<vmem>>, vector<152x32xf32>
    tpu.vector_store %arg18[%c0_48, %c64], %8 {strides = array<i32>} : memref<152x256xf32, #tpu.memory_space<vmem>>, vector<152x32xf32>,
    %c0_49 = arith.constant 0 : index
    %c96 = arith.constant 96 : index
    %63 = vector.load %arg18[%c0_49, %c96] : memref<152x256xf32, #tpu.memory_space<vmem>>, vector<152x32xf32>
    tpu.vector_store %arg18[%c0_49, %c96], %16 {strides = array<i32>} : memref<152x256xf32, #tpu.memory_space<vmem>>, vector<152x32xf32>,
    %c0_50 = arith.constant 0 : index
    %c128 = arith.constant 128 : index
    %64 = vector.load %arg18[%c0_50, %c128] : memref<152x256xf32, #tpu.memory_space<vmem>>, vector<152x64xf32>
    tpu.vector_store %arg18[%c0_50, %c128], %24 {strides = array<i32>} : memref<152x256xf32, #tpu.memory_space<vmem>>, vector<152x64xf32>,
    %c0_51 = arith.constant 0 : index
    %c192 = arith.constant 192 : index
    %65 = vector.load %arg18[%c0_51, %c192] : memref<152x256xf32, #tpu.memory_space<vmem>>, vector<152x8xf32>
    tpu.vector_store %arg18[%c0_51, %c192], %30 {strides = array<i32>} : memref<152x256xf32, #tpu.memory_space<vmem>>, vector<152x8xf32>,
    %cst_52 = arith.constant 0.000000e+00 : f32
    %66 = vector.broadcast %cst_52 : f32 to vector<152x56xf32>
    %c0_53 = arith.constant 0 : index
    %c200 = arith.constant 200 : index
    %67 = vector.load %arg18[%c0_53, %c200] : memref<152x256xf32, #tpu.memory_space<vmem>>, vector<152x56xf32>
    tpu.vector_store %arg18[%c0_53, %c200], %66 {strides = array<i32>} : memref<152x256xf32, #tpu.memory_space<vmem>>, vector<152x56xf32>,
    return
  }
  func.func @transform_0(%arg0: i32) -> (i32, i32) {
    %c0_i32 = arith.constant 0 : i32
    %c0_i32_0 = arith.constant 0 : i32
    return %arg0, %c0_i32 : i32, i32
  }
  func.func @transform_1(%arg0: i32) -> (i32, i32) {
    %c0_i32 = arith.constant 0 : i32
    %c0_i32_0 = arith.constant 0 : i32
    %c0_i32_1 = arith.constant 0 : i32
    return %c0_i32, %c0_i32_0 : i32, i32
  }
  func.func @transform_2(%arg0: i32) -> (i32, i32) {
    %c0_i32 = arith.constant 0 : i32
    %c0_i32_0 = arith.constant 0 : i32
    %c0_i32_1 = arith.constant 0 : i32
    return %c0_i32, %c0_i32_0 : i32, i32
  }
  func.func @transform_3(%arg0: i32) -> (i32, i32) {
    %c0_i32 = arith.constant 0 : i32
    %c0_i32_0 = arith.constant 0 : i32
    %c0_i32_1 = arith.constant 0 : i32
    return %c0_i32, %c0_i32_0 : i32, i32
  }
  func.func @transform_4(%arg0: i32) -> (i32, i32) {
    %c0_i32 = arith.constant 0 : i32
    %c0_i32_0 = arith.constant 0 : i32
    %c0_i32_1 = arith.constant 0 : i32
    return %c0_i32, %c0_i32_0 : i32, i32
  }
  func.func @transform_5(%arg0: i32) -> (i32, i32) {
    %c0_i32 = arith.constant 0 : i32
    %c0_i32_0 = arith.constant 0 : i32
    %c0_i32_1 = arith.constant 0 : i32
    return %c0_i32, %c0_i32_0 : i32, i32
  }
  func.func @transform_6(%arg0: i32) -> (i32, i32) {
    %c0_i32 = arith.constant 0 : i32
    %c0_i32_0 = arith.constant 0 : i32
    %c0_i32_1 = arith.constant 0 : i32
    return %c0_i32, %c0_i32_0 : i32, i32
  }
  func.func @transform_7(%arg0: i32) -> (i32, i32) {
    %c0_i32 = arith.constant 0 : i32
    %c0_i32_0 = arith.constant 0 : i32
    %c0_i32_1 = arith.constant 0 : i32
    return %c0_i32, %c0_i32_0 : i32, i32
  }
  func.func @transform_8(%arg0: i32) -> (i32, i32) {
    %c0_i32 = arith.constant 0 : i32
    %c0_i32_0 = arith.constant 0 : i32
    %c0_i32_1 = arith.constant 0 : i32
    return %c0_i32, %c0_i32_0 : i32, i32
  }
  func.func @transform_9(%arg0: i32) -> (i32, i32) {
    %c0_i32 = arith.constant 0 : i32
    %c0_i32_0 = arith.constant 0 : i32
    %c0_i32_1 = arith.constant 0 : i32
    return %c0_i32, %c0_i32_0 : i32, i32
  }
  func.func @transform_10(%arg0: i32) -> (i32, i32) {
    %c0_i32 = arith.constant 0 : i32
    %c0_i32_0 = arith.constant 0 : i32
    %c0_i32_1 = arith.constant 0 : i32
    return %c0_i32, %c0_i32_0 : i32, i32
  }
  func.func @transform_11(%arg0: i32) -> (i32, i32) {
    %c0_i32 = arith.constant 0 : i32
    %c0_i32_0 = arith.constant 0 : i32
    %c0_i32_1 = arith.constant 0 : i32
    return %c0_i32, %c0_i32_0 : i32, i32
  }
  func.func @transform_12(%arg0: i32) -> (i32, i32) {
    %c0_i32 = arith.constant 0 : i32
    %c0_i32_0 = arith.constant 0 : i32
    %c0_i32_1 = arith.constant 0 : i32
    return %c0_i32, %c0_i32_0 : i32, i32
  }
  func.func @transform_13(%arg0: i32) -> (i32, i32) {
    %c0_i32 = arith.constant 0 : i32
    %c0_i32_0 = arith.constant 0 : i32
    %c0_i32_1 = arith.constant 0 : i32
    return %c0_i32, %c0_i32_0 : i32, i32
  }
  func.func @transform_14(%arg0: i32) -> (i32, i32) {
    %c0_i32 = arith.constant 0 : i32
    %c0_i32_0 = arith.constant 0 : i32
    %c0_i32_1 = arith.constant 0 : i32
    return %c0_i32, %c0_i32_0 : i32, i32
  }
  func.func @transform_15(%arg0: i32) -> (i32, i32) {
    %c0_i32 = arith.constant 0 : i32
    %c0_i32_0 = arith.constant 0 : i32
    %c0_i32_1 = arith.constant 0 : i32
    return %c0_i32, %c0_i32_0 : i32, i32
  }
  func.func @transform_16(%arg0: i32) -> (i32, i32) {
    %c0_i32 = arith.constant 0 : i32
    %c0_i32_0 = arith.constant 0 : i32
    %c0_i32_1 = arith.constant 0 : i32
    return %c0_i32, %c0_i32_0 : i32, i32
  }
  func.func @transform_17(%arg0: i32) -> (i32, i32) {
    %c0_i32 = arith.constant 0 : i32
    %c0_i32_0 = arith.constant 0 : i32
    return %arg0, %c0_i32 : i32, i32
  }
}

</mosaic_0001>

<bundles_post_ra>
// kernel: tpu_custom_call.1
= control target key start
LH: loop header
LB: loop body
LE: loop exit
PB: predicated region body
PF: predicated region fallthrough
CT: control target
= control target key end

     0   :  { %s4066_s0 = inlined_call_operand.vmem [shape: f32[608,64], index: 0, kind: input, shape index: {}]   ;;  %s4067_s1 = inlined_call_operand.vmem [shape: bf16[64,32], index: 1, kind: input, shape index: {}]   ;;  %s4068_s2 = inlined_call_operand.vmem [shape: f32[1,32], index: 2, kind: input, shape index: {}]   ;;  %s4069_s3 = inlined_call_operand.vmem [shape: bf16[32,32], index: 3, kind: input, shape index: {}]   ;;  %s4070_s4 = inlined_call_operand.vmem [shape: f32[1,32], index: 4, kind: input, shape index: {}]   ;;  %s4071_s5 = inlined_call_operand.vmem [shape: bf16[32,64], index: 5, kind: input, shape index: {}]   ;;  %s4072_s6 = inlined_call_operand.vmem [shape: f32[1,64], index: 6, kind: input, shape index: {}]   ;;  %s4073_s7 = inlined_call_operand.vmem [shape: bf16[64,8], index: 7, kind: input, shape index: {}]   ;;  %s4074_s8 = inlined_call_operand.vmem [shape: f32[1,8], index: 8, kind: input, shape index: {}]   ;;  %s4075_s9 = inlined_call_operand.vmem [shape: bf16[8,64], index: 9, kind: input, shape index: {}]   ;;  %s4076_s10 = inlined_call_operand.vmem [shape: f32[1,64], index: 10, kind: input, shape index: {}]   ;;  %s4077_s11 = inlined_call_operand.vmem [shape: bf16[64,32], index: 11, kind: input, shape index: {}]   ;;  %s4078_s12 = inlined_call_operand.vmem [shape: f32[1,32], index: 12, kind: input, shape index: {}]   ;;  %s4079_s13 = inlined_call_operand.vmem [shape: bf16[32,32], index: 13, kind: input, shape index: {}]   ;;  %s4080_s14 = inlined_call_operand.vmem [shape: f32[1,32], index: 14, kind: input, shape index: {}]   ;;  %s4081_s15 = inlined_call_operand.vmem [shape: bf16[32,64], index: 15, kind: input, shape index: {}]   ;;  %s4082_s16 = inlined_call_operand.vmem [shape: f32[1,64], index: 16, kind: input, shape index: {}]   ;;  %s4083_s17 = inlined_call_operand.hbm [shape: f32[608,256], index: 17, kind: output, shape index: {}]  }
   0x1   :  { %4090 = sst [smem:[#allocation10_spill]] %s4066_s0 }
   0x2   :  { %4091 = sst [smem:[#allocation11_spill]] %s4067_s1 }
   0x3   :  { %22 = vsyncpa [#allocation3], 0 }
   0x4   :  { %24 = vsyncpa [#allocation3 + $0x1], 0  ;;  %s3196_s24 = smov 0   ;;  %s3198_s25 = smov 0  }
   0x5   :  { %s3200_s26 = smov 0   ;;  %s3202_s27 = smov 0  }
   0x6 LB: > { %4092 = sst [smem:[#allocation5_spill]] %s3086_s24  ;;  %s3217_s28 = sadd.s32 4294967295, %s3098_s27   ;;  %s3098_s27 = sphi %s3202_s27, %s4103_s27   ;;  %s3094_s26 = sphi %s3200_s26, %s4105_s26   ;;  %s3090_s25 = sphi %s3198_s25, %s4107_s25   ;;  %s3086_s24 = sphi %s3196_s24, %s4106_s24  }
   0x7   : > { %4093 = sst [smem:[#allocation6_spill]] %s3094_s26  ;;  %s2547_s29 = sadd.s32 4294967294, %s3098_s27  }
   0x8   : > { %s3221_s0 = sadd.s32 1, %s3098_s27   ;;  %s399_s30 = sadd.s32 1, %s3094_s26 }
   0x9   : > { %4094 = sst [smem:[#allocation7_spill]] %s3221_s0  ;;  %s396_s18 = ssub.s32 %s3098_s27, %s3221_s0 }
   0xa   : > { %p409_p0 = scmp.ne.s32.totalorder %s3094_s26, %s3090_s25  ;;  %p397_p1 = scmp.eq.s32.totalorder %s396_s18, 0 }
   0xb   : > { %p410_p2 = scmp.eq.s32.totalorder %s3217_s28, 3  ;;  %p415_p3 = scmp.ne.s32.totalorder %s3090_s25, %s3086_s24 }
   0xc   : > { %p416_p4 = scmp.eq.s32.totalorder %s2547_s29, 3  ;;  %p2550_p7 = scmp.ge.s32.totalorder %s3098_s27, 1 }
   0xd   : > { %s3232_s19 = scalar_select %p397_p1, %s3094_s26, %s399_s30  }
   0xe   : > { %p3234_p5 = por %p410_p2, %p409_p0  ;;  %p3238_p6 = por %p416_p4, %p415_p3 }
   0xf   : > { %4095 = sst [smem:[#allocation8_spill]] %s3232_s19  ;;  %p491_p8 = scmp.lt.s32.totalorder %s3098_s27, 5 }
  0x10   : > { %s4097_s20 = scalar_select %p3238_p6, 1, 0 }
  0x11   : > { %p492_p9 = pnand %p2550_p7, %p491_p8 }
  0x12   : > { %4098 = sst [smem:[#allocation9_spill]] %s4097_s20  ;;  %s4099_s23 = sld [smem:[#allocation11_spill]] (!%p492_p9)  ;;  %vm619_vm0 = vcmask (!%p492_p9), 523264   ;;  %v3020_v33 = vld [vmem:[%s4069_s3] sm:$0xff] (!%p492_p9)   ;;  %v3021_v34 = vld [vmem:[%s4069_s3 + $0x8] sm:$0xff] (!%p492_p9)   ;;  %vm814_vm1 = vcmask (!%p492_p9), 261120  }
  0x13   : > { %495 = sbr.rel (%p492_p9) target bundleno = 1863 (0x747), region = 88  ;;  %s4100_s22 = sld [smem:[#allocation10_spill]] (!%p492_p9)  ;;  %2796 = vmatprep.subr.bf16.mxu1 (!%p492_p9), %v3020_v33  ;;  %v3300_v35 = vld [vmem:[%s4068_s2] ss:$0 sm:$0xff] (!%p492_p9)  ;;  %vm1410_vm2 = vcmask (!%p492_p9), 1043456   ;;  %vm1379_vm3 = vcmask (!%p492_p9), 64512  }
  0x14   : > { %s543_s29 = smul.u32 (!%p492_p9), 19, %s3217_s28  ;;  %2797 = vmatpush3.bf16.msra.mxu1 (!%p492_p9), %v3020_v33  ;;  %s3101_s20 = smov (!%p492_p9), 96   ;;  %vm2430_vm4 = vcmask (!%p492_p9), 589312   ;;  %vm2450_vm5 = vcmask (!%p492_p9), 1048128   ;;  %vm2219_vm6 = vcmask (!%p492_p9), 785920   ;;  %vm2315_vm7 = vcmask (!%p492_p9), 1048320  }
  0x15   : > { %2798 = vmatprep.subr.bf16.mxu1 (!%p492_p9), %v3021_v34  ;;  %s2666_s21 = smul.u32 (!%p492_p9), 4864, %s3217_s28 }
  0x16   : > { %p544_p10 = scmp.lt.s32.totalorder (!%p492_p9), %s543_s29, 75 }
  0x17   : > { %s4009_s26 = scalar_lea.hbm (!%p492_p9), %s4083_s17, %s2666_s21 }
  0x18   : > { %v3016_v0 = vld [vmem:[%s4099_s23] sm:$0xff] (!%p492_p9)   ;;  %v3017_v1 = vld [vmem:[%s4099_s23 + $0x8] sm:$0xff] (!%p492_p9)   ;;  %v3018_v2 = vld [vmem:[%s4099_s23 + $0x10] sm:$0xff] (!%p492_p9)   ;;  %2799 = vmatpush3.bf16.msra.mxu1 (!%p492_p9), %v3021_v34 }
  0x19   : > { %2768 = vmatprep.subr.bf16.mxu0 (!%p492_p9), %v3016_v0  ;;  %v3019_v3 = vld [vmem:[%s4099_s23 + $0x18] sm:$0xff] (!%p492_p9)  }
  0x1a   : > { %2769 = vmatpush3.bf16.msra.mxu0 %v3016_v0  ;;  %s4109_s29 = smov (!%p544_p10, %s543_s29), 75 }
  0x1b   : > { %2770 = vmatprep.subr.bf16.mxu0 %v3017_v1  ;;  %s2551_s0 = sshll.u32 %s4109_s29, 3 }
  0x1c   : > { %s3257_s24 = scalar_lea.vmem %s4100_s22, %s2551_s0  ;;  %s540_s22 = sand.u32 1, %s3090_s25  }
  0x1d   : > { %v551_v4 = vld [vmem:[%s3257_s24] sm:$0xff]  ;;  %v552_v5 = vld [vmem:[%s3257_s24 + $0x8] sm:$0xff]  ;;  %v553_v7 = vld [vmem:[%s3257_s24 + $0x10] sm:$0xff]  ;;  %s2971_s30 = smul.u32 304, %s540_s22  ;;  %s4025_s19 = scalar_lea.sflag [#allocation3], %s540_s22 }
  0x1e   : > { %2771 = vmatpush3.bf16.msra.mxu0 %v3017_v1  ;;  %v570_v6 = vpack.c.bf16 %v552_v5, %v551_v4  ;;  %v554_v8 = vld [vmem:[%s3257_s24 + $0x18] sm:$0xff]  ;;  %v555_v9 = vld [vmem:[%s3257_s24 + $0x20] sm:$0xff]  ;;  %v556_v10 = vld [vmem:[%s3257_s24 + $0x28] sm:$0xff] }
  0x1f   : > { %2772 = vmatprep.subr.bf16.mxu0 %v3018_v2  ;;  %v571_v11 = vpack.c.bf16 %v554_v8, %v553_v7  ;;  %v572_v12 = vpack.c.bf16 %v556_v10, %v555_v9  ;;  %v557_v13 = vld [vmem:[%s3257_s24 + $0x30] sm:$0xff]  ;;  %v558_v14 = vld [vmem:[%s3257_s24 + $0x38] sm:$0xff]  ;;  %v559_v15 = vld [vmem:[%s3257_s24 + $0x40] sm:$0xff]  ;;  %s3443_s0 = scalar_lea.vmem [#allocation2], %s2971_s30 }
  0x20   : > { %2776 = vmatprep.mubr.msk.bf16.mxu0 %vm619_vm0, %v570_v6  ;;  %v560_v16 = vld [vmem:[%s3257_s24 + $0x48] sm:$0xff]  ;;  %v573_v17 = vpack.c.bf16 %v558_v14, %v557_v13  ;;  %v561_v19 = vld [vmem:[%s3257_s24 + $0x50] sm:$0xff]  ;;  %v562_v20 = vld [vmem:[%s3257_s24 + $0x58] sm:$0xff]  ;;  %s2485_s30 = sshll.u32 %s3443_s0, 4  ;;  %s4011_s30 = int_to_ptr.vmem [resolvable:$true] %s2485_s30 }
  0x21   : > { %v574_v18 = vpack.c.bf16 %v560_v16, %v559_v15  ;;  %v563_v21 = vld [vmem:[%s3257_s24 + $0x60] sm:$0xff]  ;;  %v564_v22 = vld [vmem:[%s3257_s24 + $0x68] sm:$0xff]  ;;  %v575_v23 = vpack.c.bf16 %v562_v20, %v561_v19  ;;  %v565_v25 = vld [vmem:[%s3257_s24 + $0x70] sm:$0xff]  ;;  %s3036_s29 = scalar_lea.vmem %s4011_s30, 4864 }
  0x22   : > { %2773 = vmatpush3.bf16.msra.mxu0 %v3018_v2  ;;  %v576_v24 = vpack.c.bf16 %v564_v22, %v563_v21  ;;  %v566_v26 = vld [vmem:[%s3257_s24 + $0x78] sm:$0xff]  ;;  %v567_v27 = vld [vmem:[%s3257_s24 + $0x80] sm:$0xff]  ;;  %v568_v28 = vld [vmem:[%s3257_s24 + $0x88] sm:$0xff]  ;;  %p3037_p11 = scmp.ne.s32.totalorder %s4011_s30, %s3036_s29 }
  0x23   : > { %2774 = vmatprep.subr.bf16.mxu0 %v3019_v3  ;;  %v577_v29 = vpack.c.bf16 %v566_v26, %v565_v25  ;;  %v578_v30 = vpack.c.bf16 %v568_v28, %v567_v27  ;;  %v569_v31 = vld [vmem:[%s3257_s24 + $0x90] sm:$0xff]  ;;  %s3100_s24 = smov 64  }
  0x24   : > { %v579_v32 = vpack.c.bf16 %v569_v31, %v569_v31  ;;  %p3038_p12 = pnand %p3037_p11, %p3234_p5 }
  0x26   : > { %2775 = vmatpush3.bf16.msra.mxu0 %v3019_v3  ;;  %p3039_p13 = pneg %p3038_p12 }
  0x29   : > { %2777 = vmatmul.mubr.msk.bf16.vlgmr.msra.gmra.mrb[0].mxu0 %vm619_vm0, %v571_v11 }
  0x2a   : > { %2780 = vmatprep.mubr.msk.bf16.mxu0 %vm619_vm0, %v572_v12 }
  0x31   : > { %2781 = vmatmul.mubr.msk.bf16.gmra.mrb[4].mxu0 %vm619_vm0, %v573_v17 }
  0x32   : > { %2784 = vmatprep.mubr.msk.bf16.mxu0 %vm619_vm0, %v574_v18 }
  0x39   : > { %2785 = vmatmul.mubr.msk.bf16.gmra.mrb[8].mxu0 %vm619_vm0, %v575_v23  ;;  %v3022_v23 = vld [vmem:[%s4071_s5] sm:$0xff]  }
  0x3a   : > { %2788 = vmatprep.mubr.msk.bf16.mxu0 %vm619_vm0, %v576_v24  ;;  %v3023_v24 = vld [vmem:[%s4071_s5 + $0x8] sm:$0xff]   ;;  %2820 = vmatprep.subr.bf16.mxu1 %v3022_v23 }
  0x41   : > { %2789 = vmatmul.mubr.msk.bf16.gmra.mrb[12].mxu0 %vm619_vm0, %v577_v29 }
  0x42   : > { %2792 = vmatprep.mubr.msk.bf16.mxu0 %vm619_vm0, %v578_v30 }
  0x49   : > { %2793 = vmatmul.mubr.msk.bf16.gmra.mrb[16].mxu0 %vm619_vm0, %v579_v32 }
  0xfc   : > { %v2778_v36 = vpop.f32.mrb[0].mxu0 }
  0xfd   : > { %v693_v37 = vadd.f32 %v2778_v36, %v3300_v35  ;;  %v684_v38 = vpop.f32.mrb[1].mxu0 }
  0xfe   : > { %v685_v39 = vadd.f32 %v3300_v35, %v684_v38  ;;  %v2779_v40 = vpop.f32.mrb[2].mxu0 }
  0xff   : > { %v764_v41 = vmax.f32 %v693_v37, 0.0  ;;  %v696_v42 = vadd.f32 %v2779_v40, %v3300_v35  ;;  %v687_v43 = vpop.f32.mrb[3].mxu0 }
 0x100   : > { %v762_v44 = vmax.f32 %v685_v39, 0.0  ;;  %v688_v45 = vadd.f32 %v3300_v35, %v687_v43  ;;  %v3359_v43 = vld [vmem:[%s4070_s4] ss:$0 sm:$0xff] }
 0x101   : > { %v765_v46 = vmax.f32 %v696_v42, 0.0  ;;  %2166 = vrot.lane.b32.xlu1 %v764_v41, %s3100_s24 }
 0x102   : > { %v763_v47 = vmax.f32 %v688_v45, 0.0  ;;  %2162 = vrot.lane.b32.xlu0 %v762_v44, %s3100_s24 }
 0x103   : > { %v782_v48 = vpack.c.bf16 %v765_v46, %v764_v41 }
 0x104   : > { %v2782_v49 = vpop.f32.mrb[4].mxu0  ;;  %v781_v50 = vpack.c.bf16 %v763_v47, %v762_v44 }
 0x105   : > { %v709_v51 = vadd.f32 %v2782_v49, %v3300_v35  ;;  %2168 = vrot.lane.b32.xlu1 %v765_v46, %s3100_s24  ;;  %v700_v52 = vpop.f32.mrb[5].mxu0 }
 0x106   : > { %v701_v53 = vadd.f32 %v3300_v35, %v700_v52  ;;  %v2783_v54 = vpop.f32.mrb[6].mxu0  ;;  %2164 = vrot.lane.b32.xlu0 %v763_v47, %s3100_s24  ;;  %2800 = vmatprep.mubr.msk.bf16.mxu1 %vm814_vm1, %v781_v50 }
 0x107   : > { %v768_v55 = vmax.f32 %v709_v51, 0.0  ;;  %v712_v56 = vadd.f32 %v2783_v54, %v3300_v35  ;;  %v703_v57 = vpop.f32.mrb[7].mxu0  ;;  %2801 = vmatmul.mubr.msk.bf16.vlgmr.msra.gmra.mrb[0].mxu1 %vm814_vm1, %v782_v48 }
 0x108   : > { %v704_v58 = vadd.f32 %v3300_v35, %v703_v57  ;;  %v766_v60 = vmax.f32 %v701_v53, 0.0  ;;  %2821 = vmatpush3.bf16.msra.mxu1 %v3022_v23 }
 0x109   : > { %v769_v59 = vmax.f32 %v712_v56, 0.0  ;;  %2822 = vmatprep.subr.bf16.mxu1 %v3023_v24 }
 0x10a   : > { %v767_v61 = vmax.f32 %v704_v58, 0.0  ;;  %2174 = vrot.lane.b32.xlu0 %v768_v55, %s3100_s24 }
 0x10b   : > { %v784_v62 = vpack.c.bf16 %v769_v59, %v768_v55  ;;  %2176 = vrot.lane.b32.xlu1 %v769_v59, %s3100_s24 }
 0x10c   : > { %v783_v63 = vpack.c.bf16 %v767_v61, %v766_v60  ;;  %v2786_v0 = vpop.f32.mrb[8].mxu0  ;;  %2823 = vmatpush3.bf16.msra.mxu1 %v3023_v24  ;;  %v3024_v24 = vld [vmem:[%s4073_s7] sm:$0xff]  }
 0x10d   : > { %v725_v1 = vadd.f32 %v2786_v0, %v3300_v35  ;;  %v716_v2 = vpop.f32.mrb[9].mxu0  ;;  %2844 = vmatprep.subr.bf16.mxu0 %v3024_v24 }
 0x10e   : > { %v717_v3 = vadd.f32 %v3300_v35, %v716_v2  ;;  %v2787_v4 = vpop.f32.mrb[10].mxu0  ;;  %2170 = vrot.lane.b32.xlu0 %v766_v60, %s3100_s24  ;;  %2804 = vmatprep.mubr.msk.bf16.mxu1 %vm814_vm1, %v783_v63 }
 0x10f   : > { %v772_v5 = vmax.f32 %v725_v1, 0.0  ;;  %v728_v6 = vadd.f32 %v2787_v4, %v3300_v35  ;;  %v719_v7 = vpop.f32.mrb[11].mxu0  ;;  %2172 = vrot.lane.b32.xlu1 %v767_v61, %s3100_s24  ;;  %2805 = vmatmul.mubr.msk.bf16.gmra.mrb[4].mxu1 %vm814_vm1, %v784_v62 }
 0x110   : > { %v720_v8 = vadd.f32 %v3300_v35, %v719_v7  ;;  %v770_v10 = vmax.f32 %v717_v3, 0.0  ;;  %2845 = vmatpush3.bf16.msra.mxu0 %v3024_v24 }
 0x111   : > { %v773_v9 = vmax.f32 %v728_v6, 0.0 }
 0x112   : > { %v771_v11 = vmax.f32 %v720_v8, 0.0  ;;  %2182 = vrot.lane.b32.xlu0 %v772_v5, %s3100_s24 }
 0x113   : > { %v786_v12 = vpack.c.bf16 %v773_v9, %v772_v5  ;;  %2184 = vrot.lane.b32.xlu1 %v773_v9, %s3100_s24 }
 0x114   : > { %v785_v13 = vpack.c.bf16 %v771_v11, %v770_v10  ;;  %v2790_v14 = vpop.f32.mrb[12].mxu0 }
 0x115   : > { %v741_v15 = vadd.f32 %v2790_v14, %v3300_v35  ;;  %v732_v16 = vpop.f32.mrb[13].mxu0 }
 0x116   : > { %v733_v17 = vadd.f32 %v3300_v35, %v732_v16  ;;  %v2791_v18 = vpop.f32.mrb[14].mxu0  ;;  %2178 = vrot.lane.b32.xlu0 %v770_v10, %s3100_s24  ;;  %2808 = vmatprep.mubr.msk.bf16.mxu1 %vm814_vm1, %v785_v13 }
 0x117   : > { %v776_v19 = vmax.f32 %v741_v15, 0.0  ;;  %v744_v20 = vadd.f32 %v2791_v18, %v3300_v35  ;;  %v735_v21 = vpop.f32.mrb[15].mxu0  ;;  %2180 = vrot.lane.b32.xlu1 %v771_v11, %s3100_s24  ;;  %2809 = vmatmul.mubr.msk.bf16.gmra.mrb[8].mxu1 %vm814_vm1, %v786_v12 }
 0x118   : > { %v736_v22 = vadd.f32 %v3300_v35, %v735_v21  ;;  %v774_v26 = vmax.f32 %v733_v17, 0.0 }
 0x119   : > { %v777_v25 = vmax.f32 %v744_v20, 0.0 }
 0x11a   : > { %v775_v27 = vmax.f32 %v736_v22, 0.0  ;;  %2190 = vrot.lane.b32.xlu0 %v776_v19, %s3100_s24 }
 0x11b   : > { %v788_v28 = vpack.c.bf16 %v777_v25, %v776_v19  ;;  %2192 = vrot.lane.b32.xlu1 %v777_v25, %s3100_s24 }
 0x11c   : > { %v787_v29 = vpack.c.bf16 %v775_v27, %v774_v26  ;;  %v2794_v30 = vpop.f32.mrb[16].mxu0 }
 0x11d   : > { %v757_v31 = vadd.f32 %v2794_v30, %v3300_v35  ;;  %v748_v32 = vpop.f32.mrb[17].mxu0 }
 0x11e   : > { %v749_v33 = vadd.f32 %v3300_v35, %v748_v32  ;;  %v2795_v34 = vpop.f32.mrb[18].mxu0  ;;  %2186 = vrot.lane.b32.xlu0 %v774_v26, %s3100_s24  ;;  %2812 = vmatprep.mubr.msk.bf16.mxu1 %vm814_vm1, %v787_v29 }
 0x11f   : > { %v780_v36 = vmax.f32 %v757_v31, 0.0  ;;  %v751_v37 = vpop.f32.mrb[19].mxu0  ;;  %2188 = vrot.lane.b32.xlu1 %v775_v27, %s3100_s24  ;;  %2813 = vmatmul.mubr.msk.bf16.gmra.mrb[12].mxu1 %vm814_vm1, %v788_v28  ;;  %v3025_v27 = vld [vmem:[%s4073_s7 + $0x8] sm:$0xff]  }
 0x120   : > { %v752_v38 = vadd.f32 %v3300_v35, %v751_v37  ;;  %v778_v39 = vmax.f32 %v749_v33, 0.0  ;;  %2846 = vmatprep.subr.bf16.mxu0 %v3025_v27 }
 0x121   : > { %v790_v42 = vpack.c.bf16 %v780_v36, %v780_v36  ;;  %2847 = vmatpush3.bf16.msra.mxu0 %v3025_v27 }
 0x122   : > { %v779_v40 = vmax.f32 %v752_v38, 0.0  ;;  %2198 = vrot.lane.b32.xlu0 %v780_v36, %s3100_s24  ;;  %v3026_v36 = vld [vmem:[%s4073_s7 + $0x10] sm:$0xff]  }
 0x123   : > { %2848 = vmatprep.subr.bf16.mxu0 %v3026_v36 }
 0x124   : > { %v789_v41 = vpack.c.bf16 %v779_v40, %v778_v39  ;;  %2196 = vrot.lane.b32.xlu1 %v779_v40, %s3100_s24 }
 0x125   : > { %2849 = vmatpush3.bf16.msra.mxu0 %v3026_v36 }
 0x126   : > { %2194 = vrot.lane.b32.xlu0 %v778_v39, %s3100_s24  ;;  %2816 = vmatprep.mubr.msk.bf16.mxu1 %vm814_vm1, %v789_v41 }
 0x127   : > { %2817 = vmatmul.mubr.msk.bf16.gmra.mrb[16].mxu1 %vm814_vm1, %v790_v42 }
 0x1da   : > { %v2802_v35 = vpop.f32.mrb[0].mxu1 }
 0x1db   : > { %v888_v44 = vadd.f32 %v2802_v35, %v3359_v43  ;;  %v879_v45 = vpop.f32.mrb[1].mxu1 }
 0x1dc   : > { %v880_v46 = vadd.f32 %v3359_v43, %v879_v45  ;;  %v2803_v47 = vpop.f32.mrb[2].mxu1 }
 0x1dd   : > { %v959_v48 = vmax.f32 %v888_v44, 0.0  ;;  %v891_v49 = vadd.f32 %v2803_v47, %v3359_v43  ;;  %v882_v50 = vpop.f32.mrb[3].mxu1 }
 0x1de   : > { %v883_v51 = vadd.f32 %v3359_v43, %v882_v50  ;;  %v957_v53 = vmax.f32 %v880_v46, 0.0 }
 0x1df   : > { %v960_v52 = vmax.f32 %v891_v49, 0.0  ;;  %2262 = vrot.lane.b32.xlu1 %v959_v48, %s3101_s20 }
 0x1e0   : > { %v958_v54 = vmax.f32 %v883_v51, 0.0  ;;  %v1371_v51 = vld [vmem:[%s4075_s9] sm:$0xf] }
 0x1e1   : > { %v977_v55 = vpack.c.bf16 %v960_v52, %v959_v48  ;;  %2264 = vrot.lane.b32.xlu0 %v960_v52, %s3101_s20  ;;  %2970 = vmatprep.subr.msk.bf16.mxu1 %vm1410_vm2, %v1371_v51  ;;  %v1412_v52 = vsel %vm1410_vm2, %v1371_v51, 0 }
 0x1e2   : > { %v976_v56 = vpack.c.bf16 %v958_v54, %v957_v53  ;;  %v2806_v57 = vpop.f32.mrb[4].mxu1 }
 0x1e3   : > { %v904_v58 = vadd.f32 %v2806_v57, %v3359_v43  ;;  %v895_v59 = vpop.f32.mrb[5].mxu1  ;;  %2258 = vrot.lane.b32.xlu1 %v957_v53, %s3101_s20  ;;  %v3437_v53 = vld [vmem:[%s4072_s6] ss:$0 sm:$0xff] }
 0x1e4   : > { %v896_v60 = vadd.f32 %v3359_v43, %v895_v59  ;;  %v2807_v61 = vpop.f32.mrb[6].mxu1  ;;  %2824 = vmatprep.mubr.msk.bf16.mxu1 %vm814_vm1, %v976_v56 }
 0x1e5   : > { %v963_v62 = vmax.f32 %v904_v58, 0.0  ;;  %v907_v63 = vadd.f32 %v2807_v61, %v3359_v43  ;;  %v898_v0 = vpop.f32.mrb[7].mxu1  ;;  %2260 = vrot.lane.b32.xlu0 %v958_v54, %s3101_s20  ;;  %2825 = vmatmul.mubr.msk.bf16.vlgmr.msra.gmra.mrb[20].mxu1 %vm814_vm1, %v977_v55 }
 0x1e6   : > { %v899_v1 = vadd.f32 %v3359_v43, %v898_v0  ;;  %v961_v3 = vmax.f32 %v896_v60, 0.0  ;;  %2873 = vmatpush3.bf16.msra.mxu1 %v1412_v52 }
 0x1e7   : > { %v964_v2 = vmax.f32 %v907_v63, 0.0  ;;  %2270 = vrot.lane.b32.xlu1 %v963_v62, %s3101_s20 }
 0x1e8   : > { %v962_v4 = vmax.f32 %v899_v1, 0.0 }
 0x1e9   : > { %v979_v5 = vpack.c.bf16 %v964_v2, %v963_v62  ;;  %2272 = vrot.lane.b32.xlu0 %v964_v2, %s3101_s20 }
 0x1ea   : > { %v978_v6 = vpack.c.bf16 %v962_v4, %v961_v3  ;;  %v2810_v7 = vpop.f32.mrb[8].mxu1 }
 0x1eb   : > { %v920_v8 = vadd.f32 %v2810_v7, %v3359_v43  ;;  %v911_v9 = vpop.f32.mrb[9].mxu1  ;;  %2266 = vrot.lane.b32.xlu1 %v961_v3, %s3101_s20 }
 0x1ec   : > { %v912_v10 = vadd.f32 %v3359_v43, %v911_v9  ;;  %v2811_v11 = vpop.f32.mrb[10].mxu1  ;;  %2828 = vmatprep.mubr.msk.bf16.mxu1 %vm814_vm1, %v978_v6 }
 0x1ed   : > { %v923_v12 = vadd.f32 %v2811_v11, %v3359_v43  ;;  %v914_v13 = vpop.f32.mrb[11].mxu1  ;;  %2268 = vrot.lane.b32.xlu0 %v962_v4, %s3101_s20  ;;  %2829 = vmatmul.mubr.msk.bf16.gmra.mrb[24].mxu1 %vm814_vm1, %v979_v5  ;;  %v967_v15 = vmax.f32 %v920_v8, 0.0 }
 0x1ee   : > { %v915_v14 = vadd.f32 %v3359_v43, %v914_v13  ;;  %v965_v17 = vmax.f32 %v912_v10, 0.0 }
 0x1ef   : > { %v968_v16 = vmax.f32 %v923_v12, 0.0 }
 0x1f0   : > { %v966_v18 = vmax.f32 %v915_v14, 0.0 }
 0x1f1   : > { %v981_v19 = vpack.c.bf16 %v968_v16, %v967_v15  ;;  %2278 = vrot.lane.b32.xlu0 %v967_v15, %s3101_s20  ;;  %2280 = vrot.lane.b32.xlu1 %v968_v16, %s3101_s20 }
 0x1f2   : > { %v980_v20 = vpack.c.bf16 %v966_v18, %v965_v17  ;;  %v2814_v21 = vpop.f32.mrb[12].mxu1 }
 0x1f3   : > { %v936_v22 = vadd.f32 %v2814_v21, %v3359_v43  ;;  %v927_v23 = vpop.f32.mrb[13].mxu1 }
 0x1f4   : > { %v928_v25 = vadd.f32 %v3359_v43, %v927_v23  ;;  %v2815_v26 = vpop.f32.mrb[14].mxu1  ;;  %2832 = vmatprep.mubr.msk.bf16.mxu1 %vm814_vm1, %v980_v20 }
 0x1f5   : > { %v939_v28 = vadd.f32 %v2815_v26, %v3359_v43  ;;  %v930_v29 = vpop.f32.mrb[15].mxu1  ;;  %2274 = vrot.lane.b32.xlu0 %v965_v17, %s3101_s20  ;;  %2276 = vrot.lane.b32.xlu1 %v966_v18, %s3101_s20  ;;  %v971_v31 = vmax.f32 %v936_v22, 0.0 }
 0x1f6   : > { %v931_v30 = vadd.f32 %v3359_v43, %v930_v29  ;;  %2833 = vmatmul.mubr.msk.bf16.gmra.mrb[28].mxu1 %vm814_vm1, %v981_v19  ;;  %v969_v33 = vmax.f32 %v928_v25, 0.0 }
 0x1f7   : > { %v972_v32 = vmax.f32 %v939_v28, 0.0 }
 0x1f8   : > { %v970_v34 = vmax.f32 %v931_v30, 0.0 }
 0x1f9   : > { %v983_v37 = vpack.c.bf16 %v972_v32, %v971_v31  ;;  %2286 = vrot.lane.b32.xlu0 %v971_v31, %s3101_s20  ;;  %2288 = vrot.lane.b32.xlu1 %v972_v32, %s3101_s20 }
 0x1fa   : > { %v982_v38 = vpack.c.bf16 %v970_v34, %v969_v33  ;;  %v2818_v39 = vpop.f32.mrb[16].mxu1 }
 0x1fb   : > { %v943_v40 = vpop.f32.mrb[17].mxu1  ;;  %v952_v41 = vadd.f32 %v2818_v39, %v3359_v43 }
 0x1fc   : > { %v944_v42 = vadd.f32 %v3359_v43, %v943_v40  ;;  %v2819_v35 = vpop.f32.mrb[18].mxu1  ;;  %2836 = vmatprep.mubr.msk.bf16.mxu1 %vm814_vm1, %v982_v38 }
 0x1fd   : > { %v946_v44 = vpop.f32.mrb[19].mxu1  ;;  %2282 = vrot.lane.b32.xlu0 %v969_v33, %s3101_s20  ;;  %2284 = vrot.lane.b32.xlu1 %v970_v34, %s3101_s20  ;;  %v3415_v47 = vmax.f32 %v952_v41, 0.0 }
 0x1fe   : > { %v973_v45 = vmax.f32 %v944_v42, 0.0  ;;  %v3412_v46 = vadd.f32 %v3359_v43, %v946_v44  ;;  %2837 = vmatmul.mubr.msk.bf16.gmra.mrb[32].mxu1 %vm814_vm1, %v983_v37  ;;  %v3027_v43 = vld [vmem:[%s4073_s7 + $0x18] sm:$0xff]  }
 0x1ff   : > { %v985_v50 = vpack.c.bf16 %v3415_v47, %v3415_v47  ;;  %2850 = vmatprep.subr.bf16.mxu0 %v3027_v43 }
 0x200   : > { %v974_v48 = vmax.f32 %v3412_v46, 0.0  ;;  %2851 = vmatpush3.bf16.msra.mxu0 %v3027_v43 }
 0x201   : > { %2290 = vrot.lane.b32.xlu0 %v973_v45, %s3101_s20 }
 0x202   : > { %v984_v49 = vpack.c.bf16 %v974_v48, %v973_v45 }
 0x204   : > { %2840 = vmatprep.mubr.msk.bf16.mxu1 %vm814_vm1, %v984_v49 }
 0x206   : > { %2841 = vmatmul.mubr.msk.bf16.gmra.mrb[36].mxu1 %vm814_vm1, %v985_v50 }
 0x2b8   : > { %v2826_v54 = vpop.f32.mrb[20].mxu1 }
 0x2b9   : > { %v1082_v55 = vadd.f32 %v2826_v54, %v3437_v53  ;;  %v1073_v56 = vpop.f32.mrb[21].mxu1 }
 0x2ba   : > { %v1074_v57 = vadd.f32 %v3437_v53, %v1073_v56  ;;  %v2827_v58 = vpop.f32.mrb[22].mxu1 }
 0x2bb   : > { %v1153_v59 = vmax.f32 %v1082_v55, 0.0  ;;  %v1085_v60 = vadd.f32 %v2827_v58, %v3437_v53  ;;  %v1076_v61 = vpop.f32.mrb[23].mxu1 }
 0x2bc   : > { %v1151_v62 = vmax.f32 %v1074_v57, 0.0  ;;  %v1077_v63 = vadd.f32 %v3437_v53, %v1076_v61 }
 0x2bd   : > { %2337 = vst.msk [vmem:[%s3443_s0 + $0x28] sm:$0xff] %vm619_vm0, %v1153_v59  ;;  %v1154_v0 = vmax.f32 %v1085_v60, 0.0 }
 0x2be   : > { %2335 = vst.msk [vmem:[%s3443_s0 + $0x8] sm:$0xff] %vm619_vm0, %v1151_v62  ;;  %v1152_v1 = vmax.f32 %v1077_v63, 0.0 }
 0x2bf   : > { %v1171_v2 = vpack.c.bf16 %v1154_v0, %v1153_v59  ;;  %2338 = vst.msk [vmem:[%s3443_s0 + $0x38] sm:$0xff] %vm619_vm0, %v1154_v0 }
 0x2c0   : > { %v1170_v3 = vpack.c.bf16 %v1152_v1, %v1151_v62  ;;  %2336 = vst.msk [vmem:[%s3443_s0 + $0x18] sm:$0xff] %vm619_vm0, %v1152_v1  ;;  %v2830_v4 = vpop.f32.mrb[24].mxu1  ;;  %v3511_v62 = vld [vmem:[%s4074_s8] ss:$0 sm:$0xff] }
 0x2c1   : > { %v1098_v5 = vadd.f32 %v2830_v4, %v3437_v53  ;;  %v1089_v6 = vpop.f32.mrb[25].mxu1 }
 0x2c2   : > { %v1090_v7 = vadd.f32 %v3437_v53, %v1089_v6  ;;  %v2831_v8 = vpop.f32.mrb[26].mxu1  ;;  %2852 = vmatprep.mubr.msk.bf16.mxu0 %vm619_vm0, %v1170_v3 }
 0x2c3   : > { %v1157_v9 = vmax.f32 %v1098_v5, 0.0  ;;  %v1101_v10 = vadd.f32 %v2831_v8, %v3437_v53  ;;  %v1092_v11 = vpop.f32.mrb[27].mxu1  ;;  %2853 = vmatmul.mubr.msk.bf16.vlgmr.msra.gmra.mrb[20].mxu0 %vm619_vm0, %v1171_v2 }
 0x2c4   : > { %v1155_v12 = vmax.f32 %v1090_v7, 0.0  ;;  %v1093_v13 = vadd.f32 %v3437_v53, %v1092_v11 }
 0x2c5   : > { %2341 = vst.msk [vmem:[%s3443_s0 + $0x68] sm:$0xff] %vm619_vm0, %v1157_v9  ;;  %v1158_v14 = vmax.f32 %v1101_v10, 0.0 }
 0x2c6   : > { %2339 = vst.msk [vmem:[%s3443_s0 + $0x48] sm:$0xff] %vm619_vm0, %v1155_v12  ;;  %v1156_v15 = vmax.f32 %v1093_v13, 0.0 }
 0x2c7   : > { %v1173_v16 = vpack.c.bf16 %v1158_v14, %v1157_v9  ;;  %2342 = vst.msk [vmem:[%s3443_s0 + $0x78] sm:$0xff] %vm619_vm0, %v1158_v14  ;;  %v3521_v9 = vpop.permute.xlu0 %2162 }
 0x2c8   : > { %v1172_v17 = vpack.c.bf16 %v1156_v15, %v1155_v12  ;;  %2340 = vst.msk [vmem:[%s3443_s0 + $0x58] sm:$0xff] %vm619_vm0, %v1156_v15 }
 0x2c9   : > { %v2834_v18 = vpop.f32.mrb[28].mxu1 }
 0x2ca   : > { %v1114_v19 = vadd.f32 %v2834_v18, %v3437_v53  ;;  %v1105_v20 = vpop.f32.mrb[29].mxu1  ;;  %2856 = vmatprep.mubr.msk.bf16.mxu0 %vm619_vm0, %v1172_v17 }
 0x2cb   : > { %v1106_v21 = vadd.f32 %v3437_v53, %v1105_v20  ;;  %v2835_v22 = vpop.f32.mrb[30].mxu1  ;;  %2857 = vmatmul.mubr.msk.bf16.gmra.mrb[24].mxu0 %vm619_vm0, %v1173_v16 }
 0x2cc   : > { %v1161_v23 = vmax.f32 %v1114_v19, 0.0  ;;  %v1117_v24 = vadd.f32 %v2835_v22, %v3437_v53  ;;  %v1108_v25 = vpop.f32.mrb[31].mxu1  ;;  %v3531_v19 = vpop.permute.xlu0 %2164 }
 0x2cd   : > { %v1159_v26 = vmax.f32 %v1106_v21, 0.0  ;;  %v1109_v27 = vadd.f32 %v3437_v53, %v1108_v25 }
 0x2ce   : > { %2345 = vst.msk [vmem:[%s3443_s0 + $0xa8] sm:$0xff] %vm619_vm0, %v1161_v23  ;;  %v1162_v28 = vmax.f32 %v1117_v24, 0.0 }
 0x2cf   : > { %2343 = vst.msk [vmem:[%s3443_s0 + $0x88] sm:$0xff] %vm619_vm0, %v1159_v26  ;;  %v1160_v29 = vmax.f32 %v1109_v27, 0.0 }
 0x2d0   : > { %v1175_v30 = vpack.c.bf16 %v1162_v28, %v1161_v23  ;;  %2346 = vst.msk [vmem:[%s3443_s0 + $0xb8] sm:$0xff] %vm619_vm0, %v1162_v28 }
 0x2d1   : > { %v1174_v31 = vpack.c.bf16 %v1160_v29, %v1159_v26  ;;  %2344 = vst.msk [vmem:[%s3443_s0 + $0x98] sm:$0xff] %vm619_vm0, %v1160_v29  ;;  %v2838_v32 = vpop.f32.mrb[32].mxu1  ;;  %v3540_v26 = vpop.permute.xlu0 %2174 }
 0x2d2   : > { %v1130_v33 = vadd.f32 %v2838_v32, %v3437_v53  ;;  %v1121_v34 = vpop.f32.mrb[33].mxu1  ;;  %v3544_v29 = vpop.permute.xlu1 %2166 }
 0x2d3   : > { %v1122_v36 = vadd.f32 %v3437_v53, %v1121_v34  ;;  %v2839_v37 = vpop.f32.mrb[34].mxu1  ;;  %2860 = vmatprep.mubr.msk.bf16.mxu0 %vm619_vm0, %v1174_v31 }
 0x2d4   : > { %v1165_v38 = vmax.f32 %v1130_v33, 0.0  ;;  %v1133_v39 = vadd.f32 %v2839_v37, %v3437_v53  ;;  %v1124_v40 = vpop.f32.mrb[35].mxu1  ;;  %2861 = vmatmul.mubr.msk.bf16.gmra.mrb[28].mxu0 %vm619_vm0, %v1175_v30 }
 0x2d5   : > { %v1163_v41 = vmax.f32 %v1122_v36, 0.0  ;;  %v1125_v42 = vadd.f32 %v3437_v53, %v1124_v40  ;;  %v3552_v36 = vpop.permute.xlu0 %2170 }
 0x2d6   : > { %2349 = vst.msk [vmem:[%s3443_s0 + $0xe8] sm:$0xff] %vm619_vm0, %v1165_v38  ;;  %v1166_v35 = vmax.f32 %v1133_v39, 0.0 }
 0x2d7   : > { %2347 = vst.msk [vmem:[%s3443_s0 + $0xc8] sm:$0xff] %vm619_vm0, %v1163_v41  ;;  %v1164_v44 = vmax.f32 %v1125_v42, 0.0 }
 0x2d8   : > { %v1177_v45 = vpack.c.bf16 %v1166_v35, %v1165_v38  ;;  %2350 = vst.msk [vmem:[%s3443_s0 + $0xf8] sm:$0xff] %vm619_vm0, %v1166_v35  ;;  %v3554_v38 = vpop.permute.xlu1 %2168 }
 0x2d9   : > { %v1176_v49 = vpack.c.bf16 %v1164_v44, %v1163_v41  ;;  %2348 = vst.msk [vmem:[%s3443_s0 + $0xd8] sm:$0xff] %vm619_vm0, %v1164_v44  ;;  %v2842_v50 = vpop.f32.mrb[36].mxu1  ;;  %v3028_v44 = vld [vmem:[%s4077_s11] sm:$0xff]  }
 0x2da   : > { %v1146_v43 = vadd.f32 %v2842_v50, %v3437_v53  ;;  %v1137_v51 = vpop.f32.mrb[37].mxu1  ;;  %2894 = vmatprep.subr.bf16.mxu0 %v3028_v44 }
 0x2db   : > { %v1138_v52 = vadd.f32 %v3437_v53, %v1137_v51  ;;  %v2843_v54 = vpop.f32.mrb[38].mxu1  ;;  %2864 = vmatprep.mubr.msk.bf16.mxu0 %vm619_vm0, %v1176_v49  ;;  %v3029_v49 = vld [vmem:[%s4077_s11 + $0x8] sm:$0xff]   ;;  %2895 = vmatpush3.bf16.msra.mxu0 %v3028_v44 }
 0x2dc   : > { %v1169_v55 = vmax.f32 %v1146_v43, 0.0  ;;  %v1140_v56 = vpop.f32.mrb[39].mxu1  ;;  %2865 = vmatmul.mubr.msk.bf16.gmra.mrb[32].mxu0 %vm619_vm0, %v1177_v45  ;;  %v3567_v50 = vpop.permute.xlu1 %2176  ;;  %2896 = vmatprep.subr.bf16.mxu0 %v3029_v49 }
 0x2dd   : > { %v1167_v57 = vmax.f32 %v1138_v52, 0.0  ;;  %v1141_v58 = vadd.f32 %v3437_v53, %v1140_v56  ;;  %v3570_v43 = vpop.permute.xlu0 %2182 }
 0x2de   : > { %2353 = vst.msk [vmem:[%s3443_s0 + $0x128] sm:$0xff] %vm619_vm0, %v1169_v55  ;;  %v1179_v61 = vpack.c.bf16 %v1169_v55, %v1169_v55  ;;  %v3030_v55 = vld [vmem:[%s4077_s11 + $0x10] sm:$0xff]  }
 0x2df   : > { %2351 = vst.msk [vmem:[%s3443_s0 + $0x108] sm:$0xff] %vm619_vm0, %v1167_v57  ;;  %v1168_v59 = vmax.f32 %v1141_v58, 0.0  ;;  %2897 = vmatpush3.bf16.msra.mxu0 %v3029_v49 }
 0x2e0   : > { %2898 = vmatprep.subr.bf16.mxu0 %v3030_v55 }
 0x2e1   : > { %v1178_v60 = vpack.c.bf16 %v1168_v59, %v1167_v57  ;;  %2352 = vst.msk [vmem:[%s3443_s0 + $0x118] sm:$0xff] %vm619_vm0, %v1168_v59 }
 0x2e3   : > { %2868 = vmatprep.mubr.msk.bf16.mxu0 %vm619_vm0, %v1178_v60  ;;  %v3582_v60 = vpop.permute.xlu1 %2172  ;;  %2899 = vmatpush3.bf16.msra.mxu0 %v3030_v55 }
 0x2e4   : > { %2869 = vmatmul.mubr.msk.bf16.gmra.mrb[36].mxu0 %vm619_vm0, %v1179_v61  ;;  %v3584_v61 = vpop.permute.xlu0 %2178 }
 0x396   : > { %v2854_v63 = vpop.f32.mrb[20].mxu0 }
 0x397   : > { %v1292_v53 = vadd.f32 %v2854_v63, %v3511_v62  ;;  %v1283_v0 = vpop.f32.mrb[21].mxu0 }
 0x398   : > { %v2855_v1 = vpop.f32.mrb[22].mxu0  ;;  %v1284_v4 = vadd.f32 %v3511_v62, %v1283_v0  ;;  %v3597_v0 = vpop.permute.xlu0 %2190 }
 0x399   : > { %v1295_v2 = vadd.f32 %v2855_v1, %v3511_v62  ;;  %2377 = vrot.lane.b32.xlu1 %v1292_v53, %s3100_s24  ;;  %v1286_v3 = vpop.f32.mrb[23].mxu0 }
 0x39a   : > { %v1287_v5 = vadd.f32 %v3511_v62, %v1286_v3 }
 0x39b   : > { %v1362_v6 = vpack.c.bf16 %v1295_v2, %v1292_v53  ;;  %2379 = vrot.lane.b32.xlu0 %v1295_v2, %s3100_s24 }
 0x39c   : > { %v1361_v7 = vpack.c.bf16 %v1287_v5, %v1284_v4  ;;  %v3601_v2 = vpop.permute.xlu0 %2186 }
 0x39d   : > { %2373 = vrot.lane.b32.xlu1 %v1284_v4, %s3100_s24 }
 0x39e   : > { %v2858_v8 = vpop.f32.mrb[24].mxu0  ;;  %2874 = vmatprep.mubr.msk.bf16.mxu1 %vm1379_vm3, %v1361_v7 }
 0x39f   : > { %v1308_v10 = vadd.f32 %v2858_v8, %v3511_v62  ;;  %v1299_v11 = vpop.f32.mrb[25].mxu0  ;;  %2375 = vrot.lane.b32.xlu0 %v1287_v5, %s3100_s24  ;;  %2875 = vmatmul.mubr.msk.bf16.vlgmr.msra.gmra.mrb[40].mxu1 %vm1379_vm3, %v1362_v6 }
 0x3a0   : > { %v2859_v12 = vpop.f32.mrb[26].mxu0  ;;  %v1300_v15 = vadd.f32 %v3511_v62, %v1299_v11  ;;  %v3605_v4 = vpop.permute.xlu0 %2198 }
 0x3a1   : > { %v1311_v13 = vadd.f32 %v2859_v12, %v3511_v62  ;;  %v1302_v14 = vpop.f32.mrb[27].mxu0  ;;  %2385 = vrot.lane.b32.xlu1 %v1308_v10, %s3100_s24 }
 0x3a2   : > { %v1303_v16 = vadd.f32 %v3511_v62, %v1302_v14 }
 0x3a3   : > { %v1364_v17 = vpack.c.bf16 %v1311_v13, %v1308_v10  ;;  %2387 = vrot.lane.b32.xlu0 %v1311_v13, %s3100_s24 }
 0x3a4   : > { %v1363_v18 = vpack.c.bf16 %v1303_v16, %v1300_v15  ;;  %v3609_v6 = vpop.permute.xlu0 %2194 }
 0x3a5   : > { %2381 = vrot.lane.b32.xlu1 %v1300_v15, %s3100_s24 }
 0x3a6   : > { %2878 = vmatprep.mubr.msk.bf16.mxu1 %vm1379_vm3, %v1363_v18 }
 0x3a7   : > { %v2862_v20 = vpop.f32.mrb[28].mxu0  ;;  %2383 = vrot.lane.b32.xlu0 %v1303_v16, %s3100_s24  ;;  %2879 = vmatmul.mubr.msk.bf16.gmra.mrb[44].mxu1 %vm1379_vm3, %v1364_v17  ;;  %v3031_v16 = vld [vmem:[%s4077_s11 + $0x18] sm:$0xff]  }
 0x3a8   : > { %v1324_v21 = vadd.f32 %v2862_v20, %v3511_v62  ;;  %v1315_v22 = vpop.f32.mrb[29].mxu0  ;;  %2900 = vmatprep.subr.bf16.mxu0 %v3031_v16 }
 0x3a9   : > { %v2863_v23 = vpop.f32.mrb[30].mxu0  ;;  %v1316_v27 = vadd.f32 %v3511_v62, %v1315_v22  ;;  %2901 = vmatpush3.bf16.msra.mxu0 %v3031_v16 }
 0x3aa   : > { %v1327_v24 = vadd.f32 %v2863_v23, %v3511_v62  ;;  %v1318_v25 = vpop.f32.mrb[31].mxu0  ;;  %2393 = vrot.lane.b32.xlu1 %v1324_v21, %s3100_s24 }
 0x3ab   : > { %v1319_v28 = vadd.f32 %v3511_v62, %v1318_v25 }
 0x3ac   : > { %v1366_v30 = vpack.c.bf16 %v1327_v24, %v1324_v21  ;;  %2395 = vrot.lane.b32.xlu0 %v1327_v24, %s3100_s24 }
 0x3ad   : > { %v1365_v31 = vpack.c.bf16 %v1319_v28, %v1316_v27 }
 0x3ae   : > { %2389 = vrot.lane.b32.xlu1 %v1316_v27, %s3100_s24  ;;  %v3102_v27 = vmov 0.0  }
 0x3af   : > { %v2866_v32 = vpop.f32.mrb[32].mxu0  ;;  %2882 = vmatprep.mubr.msk.bf16.mxu1 %vm1379_vm3, %v1365_v31 }
 0x3b0   : > { %v1340_v33 = vadd.f32 %v2866_v32, %v3511_v62  ;;  %v1331_v34 = vpop.f32.mrb[33].mxu0  ;;  %2391 = vrot.lane.b32.xlu0 %v1319_v28, %s3100_s24  ;;  %2883 = vmatmul.mubr.msk.bf16.gmra.mrb[48].mxu1 %vm1379_vm3, %v1366_v30 }
 0x3b1   : > { %v2867_v37 = vpop.f32.mrb[34].mxu0  ;;  %v1332_v41 = vadd.f32 %v3511_v62, %v1331_v34 }
 0x3b2   : > { %v1343_v39 = vadd.f32 %v2867_v37, %v3511_v62  ;;  %v1334_v40 = vpop.f32.mrb[35].mxu0  ;;  %2401 = vrot.lane.b32.xlu1 %v1340_v33, %s3100_s24 }
 0x3b3   : > { %v1335_v42 = vadd.f32 %v3511_v62, %v1334_v40 }
 0x3b4   : > { %v1368_v35 = vpack.c.bf16 %v1343_v39, %v1340_v33  ;;  %2403 = vrot.lane.b32.xlu0 %v1343_v39, %s3100_s24 }
 0x3b5   : > { %v1367_v45 = vpack.c.bf16 %v1335_v42, %v1332_v41 }
 0x3b6   : > { %2397 = vrot.lane.b32.xlu1 %v1332_v41, %s3100_s24  ;;  %v3032_v41 = vld [vmem:[%s4079_s13] sm:$0xff]  }
 0x3b7   : > { %v2870_v51 = vpop.f32.mrb[36].mxu0  ;;  %2886 = vmatprep.mubr.msk.bf16.mxu1 %vm1379_vm3, %v1367_v45  ;;  %2922 = vmatprep.subr.bf16.mxu1 %v3032_v41 }
 0x3b8   : > { %v1356_v52 = vadd.f32 %v2870_v51, %v3511_v62  ;;  %v1347_v54 = vpop.f32.mrb[37].mxu0  ;;  %2399 = vrot.lane.b32.xlu0 %v1335_v42, %s3100_s24  ;;  %2887 = vmatmul.mubr.msk.bf16.gmra.mrb[52].mxu1 %vm1379_vm3, %v1368_v35  ;;  %v3033_v42 = vld [vmem:[%s4079_s13 + $0x8] sm:$0xff]  }
 0x3b9   : > { %v2871_v56 = vpop.f32.mrb[38].mxu0  ;;  %v1348_v58 = vadd.f32 %v3511_v62, %v1347_v54  ;;  %2923 = vmatpush3.bf16.msra.mxu1 %v3032_v41 }
 0x3ba   : > { %v1350_v57 = vpop.f32.mrb[39].mxu0  ;;  %2409 = vrot.lane.b32.xlu1 %v1356_v52, %s3100_s24  ;;  %v1370_v53 = vpack.c.bf16 %v1356_v52, %v1356_v52  ;;  %2924 = vmatprep.subr.bf16.mxu1 %v3033_v42 }
 0x3bb   : > { %v1351_v59 = vadd.f32 %v3511_v62, %v1350_v57  ;;  %v3595_v62 = vpop.permute.xlu1 %2184  ;;  %v3735_v57 = vld [vmem:[%s4076_s10] ss:$0 sm:$0xff] }
 0x3bd   : > { %v1369_v63 = vpack.c.bf16 %v1351_v59, %v1348_v58  ;;  %2407 = vrot.lane.b32.xlu0 %v1351_v59, %s3100_s24  ;;  %2925 = vmatpush3.bf16.msra.mxu1 %v3033_v42 }
 0x3be   : > { %2405 = vrot.lane.b32.xlu1 %v1348_v58, %s3100_s24  ;;  %s3103_s24 = smov [#allocation2]  }
 0x3bf   : > { %2890 = vmatprep.mubr.msk.bf16.mxu1 %vm1379_vm3, %v1369_v63  ;;  %v3599_v1 = vpop.permute.xlu1 %2180 }
 0x3c0   : > { %2891 = vmatmul.mubr.msk.bf16.gmra.mrb[56].mxu1 %vm1379_vm3, %v1370_v53 }
 0x3c1   : > { %2294 = vrot.lane.b32.xlu0 %v3415_v47, %s3101_s20  ;;  %v3611_v47 = vpop.permute.xlu0 %2264 }
 0x3c2   : > { %2292 = vrot.lane.b32.xlu1 %v974_v48, %s3101_s20  ;;  %s3040_s20 = sshll.u32 %s3103_s24, 4  ;;  %s3041_s20 = int_to_ptr.vmem [resolvable:$false] %s3040_s20 }
 0x3c3   : > { %v3603_v3 = vpop.permute.xlu1 %2192  ;;  %s3042_s21 = scalar_lea.vmem %s3041_s20, 9728  ;;  %p3043_p0 = scmp.lt.s32.totalorder %s4011_s30, %s3041_s20 }
 0x3c4   : > { %p3044_p1 = scmp.lt.s32.totalorder %s3042_s21, %s3036_s29 }
 0x3c5   : > { %v3617_v7 = vpop.permute.xlu0 %2260 }
 0x3c6   : > { %p3045_p2 = por %p3044_p1, %p3043_p0 }
 0x3c7   : > { %v3607_v5 = vpop.permute.xlu1 %2188 }
 0x3c8   : > { %p3046_p3 = pnand %p3045_p2, %p3039_p13 }
 0x3c9   : > { %v3621_v10 = vpop.permute.xlu0 %2272 }
 0x3cb   : > { %v3613_v46 = vpop.permute.xlu1 %2196 }
 0x3cd   : > { %v3625_v12 = vpop.permute.xlu0 %2268 }
 0x3cf   : > { %v3615_v48 = vpop.permute.xlu1 %2262 }
 0x3d1   : > { %v3629_v14 = vpop.permute.xlu0 %2278 }
 0x3d3   : > { %v3619_v8 = vpop.permute.xlu1 %2258 }
 0x3d5   : > { %v3636_v17 = vpop.permute.xlu0 %2274 }
 0x3d7   : > { %v3623_v11 = vpop.permute.xlu1 %2270 }
 0x3d9   : > { %v3640_v20 = vpop.permute.xlu0 %2286 }
 0x3db   : > { %v3627_v13 = vpop.permute.xlu1 %2266 }
 0x3dd   : > { %v3644_v22 = vpop.permute.xlu0 %2282 }
 0x3df   : > { %v3631_v15 = vpop.permute.xlu1 %2280 }
 0x3e1   : > { %v3648_v24 = vpop.permute.xlu0 %2290 }
 0x3e3   : > { %v3638_v18 = vpop.permute.xlu1 %2276 }
 0x3e7   : > { %v3642_v21 = vpop.permute.xlu1 %2288 }
 0x3eb   : > { %v3646_v23 = vpop.permute.xlu1 %2284 }
 0x40b   : > { %v2378_v25 = vpop.permute.xlu1 %2377 }
 0x40c   : > { %2433 = vst.msk [vmem:[%s3443_s0 + $0x28] sm:$0xff] %vm2430_vm4, %v2378_v25 }
 0x40d   : > { %2453 = vst.msk [vmem:[%s3443_s0 + $0x28] sm:$0xff] %vm2450_vm5, %v3102_v27  ;;  %v2380_v28 = vpop.permute.xlu0 %2379 }
 0x40e   : > { %2434 = vst.msk [vmem:[%s3443_s0 + $0x38] sm:$0xff] %vm2430_vm4, %v2380_v28 }
 0x40f   : > { %2454 = vst.msk [vmem:[%s3443_s0 + $0x38] sm:$0xff] %vm2450_vm5, %v3102_v27  ;;  %v2374_v30 = vpop.permute.xlu1 %2373 }
 0x410   : > { %2431 = vst.msk [vmem:[%s3443_s0 + $0x8] sm:$0xff] %vm2430_vm4, %v2374_v30 }
 0x411   : > { %2451 = vst.msk [vmem:[%s3443_s0 + $0x8] sm:$0xff] %vm2450_vm5, %v3102_v27  ;;  %v2376_v31 = vpop.permute.xlu0 %2375 }
 0x412   : > { %2432 = vst.msk [vmem:[%s3443_s0 + $0x18] sm:$0xff] %vm2430_vm4, %v2376_v31 }
 0x413   : > { %2452 = vst.msk [vmem:[%s3443_s0 + $0x18] sm:$0xff] %vm2450_vm5, %v3102_v27  ;;  %v2386_v32 = vpop.permute.xlu1 %2385 }
 0x414   : > { %2437 = vst.msk [vmem:[%s3443_s0 + $0x68] sm:$0xff] %vm2430_vm4, %v2386_v32 }
 0x415   : > { %2457 = vst.msk [vmem:[%s3443_s0 + $0x68] sm:$0xff] %vm2450_vm5, %v3102_v27  ;;  %v2388_v33 = vpop.permute.xlu0 %2387 }
 0x416   : > { %2438 = vst.msk [vmem:[%s3443_s0 + $0x78] sm:$0xff] %vm2430_vm4, %v2388_v33 }
 0x417   : > { %2458 = vst.msk [vmem:[%s3443_s0 + $0x78] sm:$0xff] %vm2450_vm5, %v3102_v27  ;;  %v2382_v34 = vpop.permute.xlu1 %2381 }
 0x418   : > { %2435 = vst.msk [vmem:[%s3443_s0 + $0x48] sm:$0xff] %vm2430_vm4, %v2382_v34 }
 0x419   : > { %2455 = vst.msk [vmem:[%s3443_s0 + $0x48] sm:$0xff] %vm2450_vm5, %v3102_v27  ;;  %v2384_v37 = vpop.permute.xlu0 %2383 }
 0x41a   : > { %2436 = vst.msk [vmem:[%s3443_s0 + $0x58] sm:$0xff] %vm2430_vm4, %v2384_v37 }
 0x41b   : > { %2456 = vst.msk [vmem:[%s3443_s0 + $0x58] sm:$0xff] %vm2450_vm5, %v3102_v27 }
 0x41c   : > { %v2394_v39 = vpop.permute.xlu1 %2393 }
 0x41d   : > { %2441 = vst.msk [vmem:[%s3443_s0 + $0xa8] sm:$0xff] %vm2430_vm4, %v2394_v39 }
 0x41e   : > { %2461 = vst.msk [vmem:[%s3443_s0 + $0xa8] sm:$0xff] %vm2450_vm5, %v3102_v27  ;;  %v2396_v40 = vpop.permute.xlu0 %2395 }
 0x41f   : > { %2442 = vst.msk [vmem:[%s3443_s0 + $0xb8] sm:$0xff] %vm2430_vm4, %v2396_v40 }
 0x420   : > { %2462 = vst.msk [vmem:[%s3443_s0 + $0xb8] sm:$0xff] %vm2450_vm5, %v3102_v27  ;;  %v2390_v35 = vpop.permute.xlu1 %2389 }
 0x421   : > { %2439 = vst.msk [vmem:[%s3443_s0 + $0x88] sm:$0xff] %vm2430_vm4, %v2390_v35 }
 0x422   : > { %2459 = vst.msk [vmem:[%s3443_s0 + $0x88] sm:$0xff] %vm2450_vm5, %v3102_v27  ;;  %v2392_v44 = vpop.permute.xlu0 %2391 }
 0x423   : > { %2440 = vst.msk [vmem:[%s3443_s0 + $0x98] sm:$0xff] %vm2430_vm4, %v2392_v44 }
 0x424   : > { %2460 = vst.msk [vmem:[%s3443_s0 + $0x98] sm:$0xff] %vm2450_vm5, %v3102_v27  ;;  %v2402_v45 = vpop.permute.xlu1 %2401 }
 0x425   : > { %2445 = vst.msk [vmem:[%s3443_s0 + $0xe8] sm:$0xff] %vm2430_vm4, %v2402_v45 }
 0x426   : > { %2465 = vst.msk [vmem:[%s3443_s0 + $0xe8] sm:$0xff] %vm2450_vm5, %v3102_v27  ;;  %v2404_v49 = vpop.permute.xlu0 %2403 }
 0x427   : > { %2446 = vst.msk [vmem:[%s3443_s0 + $0xf8] sm:$0xff] %vm2430_vm4, %v2404_v49 }
 0x428   : > { %2466 = vst.msk [vmem:[%s3443_s0 + $0xf8] sm:$0xff] %vm2450_vm5, %v3102_v27  ;;  %v2398_v51 = vpop.permute.xlu1 %2397 }
 0x429   : > { %2443 = vst.msk [vmem:[%s3443_s0 + $0xc8] sm:$0xff] %vm2430_vm4, %v2398_v51 }
 0x42a   : > { %2463 = vst.msk [vmem:[%s3443_s0 + $0xc8] sm:$0xff] %vm2450_vm5, %v3102_v27  ;;  %v2400_v52 = vpop.permute.xlu0 %2399 }
 0x42b   : > { %2444 = vst.msk [vmem:[%s3443_s0 + $0xd8] sm:$0xff] %vm2430_vm4, %v2400_v52 }
 0x42c   : > { %2464 = vst.msk [vmem:[%s3443_s0 + $0xd8] sm:$0xff] %vm2450_vm5, %v3102_v27  ;;  %v2410_v54 = vpop.permute.xlu1 %2409 }
 0x42d   : > { %2449 = vst.msk [vmem:[%s3443_s0 + $0x128] sm:$0xff] %vm2430_vm4, %v2410_v54 }
 0x42e   : > { %2469 = vst.msk [vmem:[%s3443_s0 + $0x128] sm:$0xff] %vm2450_vm5, %v3102_v27 }
 0x42f   : > { %v2408_v55 = vpop.permute.xlu0 %2407 }
 0x430   : > { %2448 = vst.msk [vmem:[%s3443_s0 + $0x118] sm:$0xff] %vm2430_vm4, %v2408_v55  ;;  %v2406_v56 = vpop.permute.xlu1 %2405 }
 0x431   : > { %2468 = vst.msk [vmem:[%s3443_s0 + $0x118] sm:$0xff] %vm2450_vm5, %v3102_v27 }
 0x432   : > { %2447 = vst.msk [vmem:[%s3443_s0 + $0x108] sm:$0xff] %vm2430_vm4, %v2406_v56 }
 0x433   : > { %2467 = vst.msk [vmem:[%s3443_s0 + $0x108] sm:$0xff] %vm2450_vm5, %v3102_v27 }
 0x472   : > { %v2876_v58 = vpop.f32.mrb[40].mxu1 }
 0x473   : > { %v1457_v59 = vadd.f32 %v2876_v58, %v3735_v57  ;;  %v1448_v63 = vpop.f32.mrb[41].mxu1 }
 0x474   : > { %v1449_v53 = vadd.f32 %v3735_v57, %v1448_v63  ;;  %v2877_v16 = vpop.f32.mrb[42].mxu1 }
 0x475   : > { %v1460_v25 = vadd.f32 %v2877_v16, %v3735_v57  ;;  %v1451_v28 = vpop.f32.mrb[43].mxu1  ;;  %v1528_v31 = vmax.f32 %v1457_v59, 0.0 }
 0x476   : > { %v1452_v30 = vadd.f32 %v3735_v57, %v1451_v28  ;;  %v1526_v27 = vmax.f32 %v1449_v53, 0.0 }
 0x477   : > { %v1529_v32 = vmax.f32 %v1460_v25, 0.0 }
 0x478   : > { %v1527_v33 = vmax.f32 %v1452_v30, 0.0 }
 0x479   : > { %v1546_v34 = vpack.c.bf16 %v1529_v32, %v1528_v31 }
 0x47a   : > { %v1545_v37 = vpack.c.bf16 %v1527_v33, %v1526_v27  ;;  %v2880_v39 = vpop.f32.mrb[44].mxu1 }
 0x47b   : > { %v1473_v40 = vadd.f32 %v2880_v39, %v3735_v57  ;;  %v1464_v41 = vpop.f32.mrb[45].mxu1 }
 0x47c   : > { %v1465_v42 = vadd.f32 %v3735_v57, %v1464_v41  ;;  %v2881_v35 = vpop.f32.mrb[46].mxu1  ;;  %2902 = vmatprep.mubr.msk.bf16.mxu0 %vm619_vm0, %v1545_v37 }
 0x47d   : > { %v1476_v44 = vadd.f32 %v2881_v35, %v3735_v57  ;;  %v1467_v45 = vpop.f32.mrb[47].mxu1  ;;  %2903 = vmatmul.mubr.msk.bf16.vlgmr.msra.gmra.mrb[40].mxu0 %vm619_vm0, %v1546_v34  ;;  %v1532_v51 = vmax.f32 %v1473_v40, 0.0 }
 0x47e   : > { %v1468_v49 = vadd.f32 %v3735_v57, %v1467_v45  ;;  %v1530_v54 = vmax.f32 %v1465_v42, 0.0 }
 0x47f   : > { %v1533_v52 = vmax.f32 %v1476_v44, 0.0 }
 0x480   : > { %v1531_v55 = vmax.f32 %v1468_v49, 0.0 }
 0x481   : > { %v1548_v56 = vpack.c.bf16 %v1533_v52, %v1532_v51 }
 0x482   : > { %v1547_v58 = vpack.c.bf16 %v1531_v55, %v1530_v54 }
 0x483   : > { %v2884_v59 = vpop.f32.mrb[48].mxu1 }
 0x484   : > { %v1489_v63 = vadd.f32 %v2884_v59, %v3735_v57  ;;  %v1480_v53 = vpop.f32.mrb[49].mxu1  ;;  %2906 = vmatprep.mubr.msk.bf16.mxu0 %vm619_vm0, %v1547_v58 }
 0x485   : > { %v1481_v16 = vadd.f32 %v3735_v57, %v1480_v53  ;;  %v2885_v25 = vpop.f32.mrb[50].mxu1  ;;  %2907 = vmatmul.mubr.msk.bf16.gmra.mrb[44].mxu0 %vm619_vm0, %v1548_v56 }
 0x486   : > { %v1492_v28 = vadd.f32 %v2885_v25, %v3735_v57  ;;  %v1483_v30 = vpop.f32.mrb[51].mxu1  ;;  %v1536_v32 = vmax.f32 %v1489_v63, 0.0 }
 0x487   : > { %v1484_v31 = vadd.f32 %v3735_v57, %v1483_v30  ;;  %v1534_v33 = vmax.f32 %v1481_v16, 0.0 }
 0x488   : > { %v1537_v27 = vmax.f32 %v1492_v28, 0.0 }
 0x489   : > { %v1535_v34 = vmax.f32 %v1484_v31, 0.0 }
 0x48a   : > { %v1550_v37 = vpack.c.bf16 %v1537_v27, %v1536_v32 }
 0x48b   : > { %v1549_v39 = vpack.c.bf16 %v1535_v34, %v1534_v33  ;;  %v2888_v40 = vpop.f32.mrb[52].mxu1 }
 0x48c   : > { %v1505_v41 = vadd.f32 %v2888_v40, %v3735_v57  ;;  %v1496_v42 = vpop.f32.mrb[53].mxu1  ;;  %v3035_v40 = vld [vmem:[%s4081_s15 + $0x8] sm:$0xff]  }
 0x48d   : > { %v1497_v35 = vadd.f32 %v3735_v57, %v1496_v42  ;;  %v2889_v44 = vpop.f32.mrb[54].mxu1  ;;  %2910 = vmatprep.mubr.msk.bf16.mxu0 %vm619_vm0, %v1549_v39  ;;  %v3034_v39 = vld [vmem:[%s4081_s15] sm:$0xff]  }
 0x48e   : > { %v1508_v45 = vadd.f32 %v2889_v44, %v3735_v57  ;;  %v1499_v49 = vpop.f32.mrb[55].mxu1  ;;  %2911 = vmatmul.mubr.msk.bf16.gmra.mrb[48].mxu0 %vm619_vm0, %v1550_v37  ;;  %v1540_v52 = vmax.f32 %v1505_v41, 0.0  ;;  %2946 = vmatprep.subr.bf16.mxu0 %v3034_v39 }
 0x48f   : > { %v1500_v51 = vadd.f32 %v3735_v57, %v1499_v49  ;;  %v1538_v55 = vmax.f32 %v1497_v35, 0.0  ;;  %2947 = vmatpush3.bf16.msra.mxu0 %v3034_v39 }
 0x490   : > { %v1541_v54 = vmax.f32 %v1508_v45, 0.0  ;;  %2948 = vmatprep.subr.bf16.mxu0 %v3035_v40 }
 0x491   : > { %v1539_v56 = vmax.f32 %v1500_v51, 0.0 }
 0x492   : > { %v1552_v58 = vpack.c.bf16 %v1541_v54, %v1540_v52 }
 0x493   : > { %v1551_v59 = vpack.c.bf16 %v1539_v56, %v1538_v55  ;;  %v2892_v63 = vpop.f32.mrb[56].mxu1  ;;  %2949 = vmatpush3.bf16.msra.mxu0 %v3035_v40 }
 0x494   : > { %v1521_v53 = vadd.f32 %v2892_v63, %v3735_v57  ;;  %v1512_v16 = vpop.f32.mrb[57].mxu1 }
 0x495   : > { %v1513_v25 = vadd.f32 %v3735_v57, %v1512_v16  ;;  %v2893_v28 = vpop.f32.mrb[58].mxu1  ;;  %2914 = vmatprep.mubr.msk.bf16.mxu0 %vm619_vm0, %v1551_v59 }
 0x496   : > { %v1515_v30 = vpop.f32.mrb[59].mxu1  ;;  %2915 = vmatmul.mubr.msk.bf16.gmra.mrb[52].mxu0 %vm619_vm0, %v1552_v58  ;;  %v1544_v32 = vmax.f32 %v1521_v53, 0.0 }
 0x497   : > { %v1516_v31 = vadd.f32 %v3735_v57, %v1515_v30  ;;  %v1542_v27 = vmax.f32 %v1513_v25, 0.0  ;;  %v3775_v57 = vld [vmem:[%s4078_s12] ss:$0 sm:$0xff] }
 0x498   : > { %v1554_v37 = vpack.c.bf16 %v1544_v32, %v1544_v32 }
 0x499   : > { %v1543_v33 = vmax.f32 %v1516_v31, 0.0 }
 0x49b   : > { %v1553_v34 = vpack.c.bf16 %v1543_v33, %v1542_v27 }
 0x49d   : > { %2918 = vmatprep.mubr.msk.bf16.mxu0 %vm619_vm0, %v1553_v34 }
 0x49e   : > { %2919 = vmatmul.mubr.msk.bf16.gmra.mrb[56].mxu0 %vm619_vm0, %v1554_v37 }
 0x550   : > { %v2904_v41 = vpop.f32.mrb[40].mxu0 }
 0x551   : > { %v1667_v42 = vadd.f32 %v2904_v41, %v3775_v57  ;;  %v1658_v35 = vpop.f32.mrb[41].mxu0 }
 0x552   : > { %v1659_v44 = vadd.f32 %v3775_v57, %v1658_v35  ;;  %v2905_v45 = vpop.f32.mrb[42].mxu0 }
 0x553   : > { %v1670_v49 = vadd.f32 %v2905_v45, %v3775_v57  ;;  %v1661_v51 = vpop.f32.mrb[43].mxu0  ;;  %v1738_v54 = vmax.f32 %v1667_v42, 0.0 }
 0x554   : > { %v1662_v52 = vadd.f32 %v3775_v57, %v1661_v51  ;;  %v1736_v56 = vmax.f32 %v1659_v44, 0.0 }
 0x555   : > { %v1739_v55 = vmax.f32 %v1670_v49, 0.0 }
 0x556   : > { %v1737_v58 = vmax.f32 %v1662_v52, 0.0 }
 0x557   : > { %v1756_v59 = vpack.c.bf16 %v1739_v55, %v1738_v54 }
 0x558   : > { %v1755_v63 = vpack.c.bf16 %v1737_v58, %v1736_v56  ;;  %v2908_v53 = vpop.f32.mrb[44].mxu0 }
 0x559   : > { %v1683_v16 = vadd.f32 %v2908_v53, %v3775_v57  ;;  %v1674_v25 = vpop.f32.mrb[45].mxu0 }
 0x55a   : > { %v1675_v28 = vadd.f32 %v3775_v57, %v1674_v25  ;;  %v2909_v30 = vpop.f32.mrb[46].mxu0  ;;  %2926 = vmatprep.mubr.msk.bf16.mxu1 %vm814_vm1, %v1755_v63 }
 0x55b   : > { %v1686_v31 = vadd.f32 %v2909_v30, %v3775_v57  ;;  %v1677_v32 = vpop.f32.mrb[47].mxu0  ;;  %2927 = vmatmul.mubr.msk.bf16.vlgmr.msra.gmra.mrb[60].mxu1 %vm814_vm1, %v1756_v59  ;;  %v1742_v33 = vmax.f32 %v1683_v16, 0.0 }
 0x55c   : > { %v1678_v27 = vadd.f32 %v3775_v57, %v1677_v32  ;;  %v1740_v37 = vmax.f32 %v1675_v28, 0.0 }
 0x55d   : > { %v1743_v34 = vmax.f32 %v1686_v31, 0.0 }
 0x55e   : > { %v1741_v39 = vmax.f32 %v1678_v27, 0.0 }
 0x55f   : > { %v1758_v40 = vpack.c.bf16 %v1743_v34, %v1742_v33 }
 0x560   : > { %v1757_v41 = vpack.c.bf16 %v1741_v39, %v1740_v37 }
 0x561   : > { %v2912_v42 = vpop.f32.mrb[48].mxu0 }
 0x562   : > { %v1699_v35 = vadd.f32 %v2912_v42, %v3775_v57  ;;  %v1690_v44 = vpop.f32.mrb[49].mxu0  ;;  %2930 = vmatprep.mubr.msk.bf16.mxu1 %vm814_vm1, %v1757_v41 }
 0x563   : > { %v1691_v45 = vadd.f32 %v3775_v57, %v1690_v44  ;;  %v2913_v49 = vpop.f32.mrb[50].mxu0  ;;  %2931 = vmatmul.mubr.msk.bf16.gmra.mrb[64].mxu1 %vm814_vm1, %v1758_v40 }
 0x564   : > { %v1702_v51 = vadd.f32 %v2913_v49, %v3775_v57  ;;  %v1693_v52 = vpop.f32.mrb[51].mxu0  ;;  %v1746_v55 = vmax.f32 %v1699_v35, 0.0 }
 0x565   : > { %v1694_v54 = vadd.f32 %v3775_v57, %v1693_v52  ;;  %v1744_v58 = vmax.f32 %v1691_v45, 0.0 }
 0x566   : > { %v1747_v56 = vmax.f32 %v1702_v51, 0.0 }
 0x567   : > { %v1745_v59 = vmax.f32 %v1694_v54, 0.0 }
 0x568   : > { %v1760_v63 = vpack.c.bf16 %v1747_v56, %v1746_v55 }
 0x569   : > { %v1759_v53 = vpack.c.bf16 %v1745_v59, %v1744_v58  ;;  %v2916_v16 = vpop.f32.mrb[52].mxu0 }
 0x56a   : > { %v1715_v25 = vadd.f32 %v2916_v16, %v3775_v57  ;;  %v1706_v28 = vpop.f32.mrb[53].mxu0 }
 0x56b   : > { %v1707_v30 = vadd.f32 %v3775_v57, %v1706_v28  ;;  %v2917_v31 = vpop.f32.mrb[54].mxu0  ;;  %2934 = vmatprep.mubr.msk.bf16.mxu1 %vm814_vm1, %v1759_v53  ;;  %v3809_v53 = vld [vmem:[%s4080_s14] ss:$0 sm:$0xff] }
 0x56c   : > { %v1718_v32 = vadd.f32 %v2917_v31, %v3775_v57  ;;  %v1709_v27 = vpop.f32.mrb[55].mxu0  ;;  %2935 = vmatmul.mubr.msk.bf16.gmra.mrb[68].mxu1 %vm814_vm1, %v1760_v63  ;;  %v1750_v34 = vmax.f32 %v1715_v25, 0.0 }
 0x56d   : > { %v1710_v33 = vadd.f32 %v3775_v57, %v1709_v27  ;;  %v1748_v39 = vmax.f32 %v1707_v30, 0.0 }
 0x56e   : > { %v1751_v37 = vmax.f32 %v1718_v32, 0.0 }
 0x56f   : > { %v1749_v40 = vmax.f32 %v1710_v33, 0.0 }
 0x570   : > { %v1762_v41 = vpack.c.bf16 %v1751_v37, %v1750_v34 }
 0x571   : > { %v1761_v42 = vpack.c.bf16 %v1749_v40, %v1748_v39  ;;  %v2920_v35 = vpop.f32.mrb[56].mxu0 }
 0x572   : > { %v1731_v44 = vadd.f32 %v2920_v35, %v3775_v57  ;;  %v1722_v45 = vpop.f32.mrb[57].mxu0 }
 0x573   : > { %v1723_v49 = vadd.f32 %v3775_v57, %v1722_v45  ;;  %v2921_v51 = vpop.f32.mrb[58].mxu0  ;;  %2938 = vmatprep.mubr.msk.bf16.mxu1 %vm814_vm1, %v1761_v42 }
 0x574   : > { %v1725_v52 = vpop.f32.mrb[59].mxu0  ;;  %2939 = vmatmul.mubr.msk.bf16.gmra.mrb[72].mxu1 %vm814_vm1, %v1762_v41  ;;  %v1754_v55 = vmax.f32 %v1731_v44, 0.0 }
 0x575   : > { %v1726_v54 = vadd.f32 %v3775_v57, %v1725_v52  ;;  %v1752_v56 = vmax.f32 %v1723_v49, 0.0 }
 0x576   : > { %v1764_v63 = vpack.c.bf16 %v1754_v55, %v1754_v55 }
 0x577   : > { %v1753_v58 = vmax.f32 %v1726_v54, 0.0 }
 0x579   : > { %v1763_v59 = vpack.c.bf16 %v1753_v58, %v1752_v56 }
 0x57b   : > { %2942 = vmatprep.mubr.msk.bf16.mxu1 %vm814_vm1, %v1763_v59 }
 0x57c   : > { %2943 = vmatmul.mubr.msk.bf16.gmra.mrb[76].mxu1 %vm814_vm1, %v1764_v63 }
 0x62e   : > { %v2928_v16 = vpop.f32.mrb[60].mxu1 }
 0x62f   : > { %v1861_v25 = vadd.f32 %v2928_v16, %v3809_v53  ;;  %v1852_v28 = vpop.f32.mrb[61].mxu1 }
 0x630   : > { %v1853_v57 = vadd.f32 %v3809_v53, %v1852_v28  ;;  %v2929_v30 = vpop.f32.mrb[62].mxu1 }
 0x631   : > { %v1864_v31 = vadd.f32 %v2929_v30, %v3809_v53  ;;  %v1855_v32 = vpop.f32.mrb[63].mxu1  ;;  %v1932_v33 = vmax.f32 %v1861_v25, 0.0 }
 0x632   : > { %v1856_v27 = vadd.f32 %v3809_v53, %v1855_v32  ;;  %v1930_v37 = vmax.f32 %v1853_v57, 0.0 }
 0x633   : > { %v1933_v34 = vmax.f32 %v1864_v31, 0.0 }
 0x634   : > { %v1931_v39 = vmax.f32 %v1856_v27, 0.0 }
 0x635   : > { %v1950_v40 = vpack.c.bf16 %v1933_v34, %v1932_v33 }
 0x636   : > { %v1949_v41 = vpack.c.bf16 %v1931_v39, %v1930_v37  ;;  %v2932_v42 = vpop.f32.mrb[64].mxu1 }
 0x637   : > { %v1877_v35 = vadd.f32 %v2932_v42, %v3809_v53  ;;  %v1868_v44 = vpop.f32.mrb[65].mxu1 }
 0x638   : > { %v1869_v45 = vadd.f32 %v3809_v53, %v1868_v44  ;;  %v2933_v49 = vpop.f32.mrb[66].mxu1  ;;  %2950 = vmatprep.mubr.msk.bf16.mxu0 %vm814_vm1, %v1949_v41 }
 0x639   : > { %v1880_v51 = vadd.f32 %v2933_v49, %v3809_v53  ;;  %v1871_v52 = vpop.f32.mrb[67].mxu1  ;;  %2951 = vmatmul.mubr.msk.bf16.vlgmr.msra.gmra.mrb[60].mxu0 %vm814_vm1, %v1950_v40  ;;  %v1936_v55 = vmax.f32 %v1877_v35, 0.0 }
 0x63a   : > { %v1872_v54 = vadd.f32 %v3809_v53, %v1871_v52  ;;  %v1934_v58 = vmax.f32 %v1869_v45, 0.0 }
 0x63b   : > { %v1937_v56 = vmax.f32 %v1880_v51, 0.0 }
 0x63c   : > { %v1935_v59 = vmax.f32 %v1872_v54, 0.0 }
 0x63d   : > { %v1952_v63 = vpack.c.bf16 %v1937_v56, %v1936_v55 }
 0x63e   : > { %v1951_v16 = vpack.c.bf16 %v1935_v59, %v1934_v58 }
 0x63f   : > { %v2936_v25 = vpop.f32.mrb[68].mxu1 }
 0x640   : > { %v1893_v28 = vadd.f32 %v2936_v25, %v3809_v53  ;;  %v1884_v57 = vpop.f32.mrb[69].mxu1  ;;  %2954 = vmatprep.mubr.msk.bf16.mxu0 %vm814_vm1, %v1951_v16 }
 0x641   : > { %v1885_v30 = vadd.f32 %v3809_v53, %v1884_v57  ;;  %v2937_v31 = vpop.f32.mrb[70].mxu1  ;;  %2955 = vmatmul.mubr.msk.bf16.gmra.mrb[64].mxu0 %vm814_vm1, %v1952_v63 }
 0x642   : > { %v1896_v32 = vadd.f32 %v2937_v31, %v3809_v53  ;;  %v1887_v27 = vpop.f32.mrb[71].mxu1  ;;  %v1940_v34 = vmax.f32 %v1893_v28, 0.0 }
 0x643   : > { %v1888_v33 = vadd.f32 %v3809_v53, %v1887_v27  ;;  %v1938_v39 = vmax.f32 %v1885_v30, 0.0 }
 0x644   : > { %v1941_v37 = vmax.f32 %v1896_v32, 0.0 }
 0x645   : > { %v1939_v40 = vmax.f32 %v1888_v33, 0.0 }
 0x646   : > { %v1954_v41 = vpack.c.bf16 %v1941_v37, %v1940_v34 }
 0x647   : > { %v1953_v42 = vpack.c.bf16 %v1939_v40, %v1938_v39  ;;  %v2940_v35 = vpop.f32.mrb[72].mxu1 }
 0x648   : > { %v1909_v44 = vadd.f32 %v2940_v35, %v3809_v53  ;;  %v1900_v45 = vpop.f32.mrb[73].mxu1 }
 0x649   : > { %v1901_v49 = vadd.f32 %v3809_v53, %v1900_v45  ;;  %v2941_v51 = vpop.f32.mrb[74].mxu1  ;;  %2958 = vmatprep.mubr.msk.bf16.mxu0 %vm814_vm1, %v1953_v42  ;;  %v3843_v42 = vld [vmem:[%s4082_s16] ss:$0 sm:$0xff] }
 0x64a   : > { %v1912_v52 = vadd.f32 %v2941_v51, %v3809_v53  ;;  %v1903_v54 = vpop.f32.mrb[75].mxu1  ;;  %2959 = vmatmul.mubr.msk.bf16.gmra.mrb[68].mxu0 %vm814_vm1, %v1954_v41  ;;  %v1944_v56 = vmax.f32 %v1909_v44, 0.0 }
 0x64b   : > { %v1904_v55 = vadd.f32 %v3809_v53, %v1903_v54  ;;  %v1942_v59 = vmax.f32 %v1901_v49, 0.0 }
 0x64c   : > { %v1945_v58 = vmax.f32 %v1912_v52, 0.0 }
 0x64d   : > { %v1943_v63 = vmax.f32 %v1904_v55, 0.0 }
 0x64e   : > { %v1956_v16 = vpack.c.bf16 %v1945_v58, %v1944_v56 }
 0x64f   : > { %v1955_v25 = vpack.c.bf16 %v1943_v63, %v1942_v59  ;;  %v2944_v28 = vpop.f32.mrb[76].mxu1 }
 0x650   : > { %v1925_v57 = vadd.f32 %v2944_v28, %v3809_v53  ;;  %v1916_v30 = vpop.f32.mrb[77].mxu1 }
 0x651   : > { %v1917_v31 = vadd.f32 %v3809_v53, %v1916_v30  ;;  %v2945_v32 = vpop.f32.mrb[78].mxu1  ;;  %2962 = vmatprep.mubr.msk.bf16.mxu0 %vm814_vm1, %v1955_v25 }
 0x652   : > { %v1919_v27 = vpop.f32.mrb[79].mxu1  ;;  %2963 = vmatmul.mubr.msk.bf16.gmra.mrb[72].mxu0 %vm814_vm1, %v1956_v16  ;;  %v1948_v34 = vmax.f32 %v1925_v57, 0.0 }
 0x653   : > { %v1920_v33 = vadd.f32 %v3809_v53, %v1919_v27  ;;  %v1946_v37 = vmax.f32 %v1917_v31, 0.0 }
 0x654   : > { %v1958_v41 = vpack.c.bf16 %v1948_v34, %v1948_v34 }
 0x655   : > { %v1947_v39 = vmax.f32 %v1920_v33, 0.0 }
 0x657   : > { %v1957_v40 = vpack.c.bf16 %v1947_v39, %v1946_v37 }
 0x659   : > { %2966 = vmatprep.mubr.msk.bf16.mxu0 %vm814_vm1, %v1957_v40 }
 0x65a   : > { %2967 = vmatmul.mubr.msk.bf16.gmra.mrb[76].mxu0 %vm814_vm1, %v1958_v41 }
 0x70c   : > { %v2952_v53 = vpop.f32.mrb[60].mxu0 }
 0x70d   : > { %v2055_v35 = vadd.f32 %v2952_v53, %v3843_v42  ;;  %v2046_v44 = vpop.f32.mrb[61].mxu0 }
 0x70e   : > { %v2047_v45 = vadd.f32 %v3843_v42, %v2046_v44  ;;  %v2953_v49 = vpop.f32.mrb[62].mxu0 }
 0x70f   : > { %2126 = vst.msk [vmem:[%s3443_s0 + $0x20] sm:$0xff] %vm619_vm0, %v2055_v35  ;;  %v2058_v51 = vadd.f32 %v2953_v49, %v3843_v42  ;;  %v2049_v52 = vpop.f32.mrb[63].mxu0 }
 0x710   : > { %2222 = vst.msk [vmem:[%s3443_s0 + $0x20] sm:$0xff] %vm2219_vm6, %v3544_v29  ;;  %v2050_v54 = vadd.f32 %v3843_v42, %v2049_v52 }
 0x711   : > { %2124 = vst.msk [vmem:[%s3443_s0] sm:$0xff] %vm619_vm0, %v2047_v45  ;;  %2127 = vst.msk [vmem:[%s3443_s0 + $0x30] sm:$0xff] %vm619_vm0, %v2058_v51 }
 0x712   : > { %2318 = vst.msk [vmem:[%s3443_s0 + $0x20] sm:$0xff] %vm2315_vm7, %v3615_v48 }
 0x713   : > { %2220 = vst.msk [vmem:[%s3443_s0] sm:$0xff] %vm2219_vm6, %v3521_v9  ;;  %2223 = vst.msk [vmem:[%s3443_s0 + $0x30] sm:$0xff] %vm2219_vm6, %v3554_v38 }
 0x714   : > { %2316 = vst.msk [vmem:[%s3443_s0] sm:$0xff] %vm2315_vm7, %v3619_v8  ;;  %2319 = vst.msk [vmem:[%s3443_s0 + $0x30] sm:$0xff] %vm2315_vm7, %v3611_v47  ;;  %v2956_v9 = vpop.f32.mrb[64].mxu0 }
 0x715   : > { %2125 = vst.msk [vmem:[%s3443_s0 + $0x10] sm:$0xff] %vm619_vm0, %v2050_v54  ;;  %v2071_v29 = vadd.f32 %v2956_v9, %v3843_v42  ;;  %v2062_v38 = vpop.f32.mrb[65].mxu0 }
 0x716   : > { %2221 = vst.msk [vmem:[%s3443_s0 + $0x10] sm:$0xff] %vm2219_vm6, %v3531_v19  ;;  %v2063_v48 = vadd.f32 %v3843_v42, %v2062_v38  ;;  %v2957_v47 = vpop.f32.mrb[66].mxu0 }
 0x717   : > { %2317 = vst.msk [vmem:[%s3443_s0 + $0x10] sm:$0xff] %vm2315_vm7, %v3617_v7  ;;  %v2074_v19 = vadd.f32 %v2957_v47, %v3843_v42  ;;  %v2065_v8 = vpop.f32.mrb[67].mxu0 }
 0x718   : > { %2130 = vst.msk [vmem:[%s3443_s0 + $0x60] sm:$0xff] %vm619_vm0, %v2071_v29  ;;  %2128 = vst.msk [vmem:[%s3443_s0 + $0x40] sm:$0xff] %vm619_vm0, %v2063_v48  ;;  %v2066_v7 = vadd.f32 %v3843_v42, %v2065_v8 }
 0x719   : > { %2226 = vst.msk [vmem:[%s3443_s0 + $0x60] sm:$0xff] %vm2219_vm6, %v3540_v26  ;;  %2224 = vst.msk [vmem:[%s3443_s0 + $0x40] sm:$0xff] %vm2219_vm6, %v3552_v36 }
 0x71a   : > { %2322 = vst.msk [vmem:[%s3443_s0 + $0x60] sm:$0xff] %vm2315_vm7, %v3623_v11  ;;  %2320 = vst.msk [vmem:[%s3443_s0 + $0x40] sm:$0xff] %vm2315_vm7, %v3627_v13 }
 0x71b   : > { %2131 = vst.msk [vmem:[%s3443_s0 + $0x70] sm:$0xff] %vm619_vm0, %v2074_v19  ;;  %2129 = vst.msk [vmem:[%s3443_s0 + $0x50] sm:$0xff] %vm619_vm0, %v2066_v7 }
 0x71c   : > { %2227 = vst.msk [vmem:[%s3443_s0 + $0x70] sm:$0xff] %vm2219_vm6, %v3567_v50  ;;  %2225 = vst.msk [vmem:[%s3443_s0 + $0x50] sm:$0xff] %vm2219_vm6, %v3582_v60 }
 0x71d   : > { %2323 = vst.msk [vmem:[%s3443_s0 + $0x70] sm:$0xff] %vm2315_vm7, %v3621_v10  ;;  %2321 = vst.msk [vmem:[%s3443_s0 + $0x50] sm:$0xff] %vm2315_vm7, %v3625_v12  ;;  %v2960_v26 = vpop.f32.mrb[68].mxu0 }
 0x71e   : > { %v2087_v36 = vadd.f32 %v2960_v26, %v3843_v42  ;;  %v2078_v50 = vpop.f32.mrb[69].mxu0 }
 0x71f   : > { %v2079_v11 = vadd.f32 %v3843_v42, %v2078_v50  ;;  %v2961_v10 = vpop.f32.mrb[70].mxu0 }
 0x720   : > { %2134 = vst.msk [vmem:[%s3443_s0 + $0xa0] sm:$0xff] %vm619_vm0, %v2087_v36  ;;  %v2090_v60 = vadd.f32 %v2961_v10, %v3843_v42  ;;  %v2081_v13 = vpop.f32.mrb[71].mxu0 }
 0x721   : > { %2230 = vst.msk [vmem:[%s3443_s0 + $0xa0] sm:$0xff] %vm2219_vm6, %v3570_v43  ;;  %v2082_v12 = vadd.f32 %v3843_v42, %v2081_v13 }
 0x722   : > { %2132 = vst.msk [vmem:[%s3443_s0 + $0x80] sm:$0xff] %vm619_vm0, %v2079_v11  ;;  %2135 = vst.msk [vmem:[%s3443_s0 + $0xb0] sm:$0xff] %vm619_vm0, %v2090_v60 }
 0x723   : > { %2326 = vst.msk [vmem:[%s3443_s0 + $0xa0] sm:$0xff] %vm2315_vm7, %v3629_v14 }
 0x724   : > { %2228 = vst.msk [vmem:[%s3443_s0 + $0x80] sm:$0xff] %vm2219_vm6, %v3584_v61  ;;  %2231 = vst.msk [vmem:[%s3443_s0 + $0xb0] sm:$0xff] %vm2219_vm6, %v3595_v62 }
 0x725   : > { %2324 = vst.msk [vmem:[%s3443_s0 + $0x80] sm:$0xff] %vm2315_vm7, %v3636_v17  ;;  %2327 = vst.msk [vmem:[%s3443_s0 + $0xb0] sm:$0xff] %vm2315_vm7, %v3631_v15  ;;  %v2964_v43 = vpop.f32.mrb[72].mxu0 }
 0x726   : > { %2133 = vst.msk [vmem:[%s3443_s0 + $0x90] sm:$0xff] %vm619_vm0, %v2082_v12  ;;  %v2103_v61 = vadd.f32 %v2964_v43, %v3843_v42  ;;  %v2094_v62 = vpop.f32.mrb[73].mxu0 }
 0x727   : > { %2229 = vst.msk [vmem:[%s3443_s0 + $0x90] sm:$0xff] %vm2219_vm6, %v3599_v1  ;;  %v2095_v14 = vadd.f32 %v3843_v42, %v2094_v62  ;;  %v2965_v15 = vpop.f32.mrb[74].mxu0 }
 0x728   : > { %2325 = vst.msk [vmem:[%s3443_s0 + $0x90] sm:$0xff] %vm2315_vm7, %v3638_v18  ;;  %v2106_v1 = vadd.f32 %v2965_v15, %v3843_v42  ;;  %v2097_v17 = vpop.f32.mrb[75].mxu0 }
 0x729   : > { %2138 = vst.msk [vmem:[%s3443_s0 + $0xe0] sm:$0xff] %vm619_vm0, %v2103_v61  ;;  %2136 = vst.msk [vmem:[%s3443_s0 + $0xc0] sm:$0xff] %vm619_vm0, %v2095_v14  ;;  %v2098_v18 = vadd.f32 %v3843_v42, %v2097_v17 }
 0x72a   : > { %2234 = vst.msk [vmem:[%s3443_s0 + $0xe0] sm:$0xff] %vm2219_vm6, %v3597_v0  ;;  %2232 = vst.msk [vmem:[%s3443_s0 + $0xc0] sm:$0xff] %vm2219_vm6, %v3601_v2 }
 0x72b   : > { %2330 = vst.msk [vmem:[%s3443_s0 + $0xe0] sm:$0xff] %vm2315_vm7, %v3640_v20  ;;  %2328 = vst.msk [vmem:[%s3443_s0 + $0xc0] sm:$0xff] %vm2315_vm7, %v3644_v22 }
 0x72c   : > { %2139 = vst.msk [vmem:[%s3443_s0 + $0xf0] sm:$0xff] %vm619_vm0, %v2106_v1  ;;  %2137 = vst.msk [vmem:[%s3443_s0 + $0xd0] sm:$0xff] %vm619_vm0, %v2098_v18 }
 0x72d   : > { %2235 = vst.msk [vmem:[%s3443_s0 + $0xf0] sm:$0xff] %vm2219_vm6, %v3603_v3  ;;  %2233 = vst.msk [vmem:[%s3443_s0 + $0xd0] sm:$0xff] %vm2219_vm6, %v3607_v5  ;;  %v2968_v0 = vpop.f32.mrb[76].mxu0 }
 0x72e   : > { %2331 = vst.msk [vmem:[%s3443_s0 + $0xf0] sm:$0xff] %vm2315_vm7, %v3642_v21  ;;  %2329 = vst.msk [vmem:[%s3443_s0 + $0xd0] sm:$0xff] %vm2315_vm7, %v3646_v23  ;;  %v2119_v2 = vadd.f32 %v2968_v0, %v3843_v42  ;;  %v2110_v20 = vpop.f32.mrb[77].mxu0  ;;  %v2295_v21 = vpop.permute.xlu0 %2294 }
 0x72f   : > { %v2111_v3 = vadd.f32 %v3843_v42, %v2110_v20  ;;  %v2969_v22 = vpop.f32.mrb[78].mxu0 }
 0x730   : > { %2142 = vst.msk [vmem:[%s3443_s0 + $0x120] sm:$0xff] %vm619_vm0, %v2119_v2  ;;  %v2113_v5 = vpop.f32.mrb[79].mxu0 }
 0x731   : > { %2238 = vst.msk [vmem:[%s3443_s0 + $0x120] sm:$0xff] %vm2219_vm6, %v3605_v4  ;;  %v2114_v23 = vadd.f32 %v3843_v42, %v2113_v5  ;;  %v2293_v4 = vpop.permute.xlu1 %2292 }
 0x732   : > { %2140 = vst.msk [vmem:[%s3443_s0 + $0x100] sm:$0xff] %vm619_vm0, %v2111_v3 }
 0x733   : > { %2334 = vst.msk [vmem:[%s3443_s0 + $0x120] sm:$0xff] %vm2315_vm7, %v2295_v21 }
 0x734   : > { %2236 = vst.msk [vmem:[%s3443_s0 + $0x100] sm:$0xff] %vm2219_vm6, %v3609_v6 }
 0x735   : > { %2332 = vst.msk [vmem:[%s3443_s0 + $0x100] sm:$0xff] %vm2315_vm7, %v3648_v24 }
 0x736   : > { %2141 = vst.msk [vmem:[%s3443_s0 + $0x110] sm:$0xff] %vm619_vm0, %v2114_v23 }
 0x737   : > { %2237 = vst.msk [vmem:[%s3443_s0 + $0x110] sm:$0xff] %vm2219_vm6, %v3613_v46 }
 0x738   : > { %2333 = vst.msk [vmem:[%s3443_s0 + $0x110] sm:$0xff] %vm2315_vm7, %v2293_v4 }
 0x739   : > { %3049 = shalt.err (!%p3046_p3)
}
 0x73a   : > { %s3050_s22 = scalar_lea.hbm %s4009_s26, 4864  ;;  %s3054_s18 = scalar_lea.hbm %s4083_s17, 19456 }
 0x73b   : > { %p3051_p4 = scmp.ne.s32.totalorder %s4009_s26, %s3050_s22  ;;  %p3055_p9 = scmp.lt.u32.totalorder %s4009_s26, %s4083_s17 }
 0x73c   : > { %p3056_p10 = scmp.lt.u32.totalorder %s3054_s18, %s3050_s22  ;;  %p3058_p12 = scmp.lt.u32.totalorder %s3050_s22, %s4009_s26 }
 0x73d   : > { %p3052_p7 = pnand %p3051_p4, %p3234_p5 }
 0x73e   : > { %p3057_p11 = por %p3056_p10, %p3055_p9 }
 0x73f   : > { %p3053_p8 = pneg %p3052_p7 }
 0x740   : > { %p3059_p13 = por %p3058_p12, %p3057_p11 }
 0x742   : > { %p3060_p0 = pnand %p3059_p13, %p3053_p8 }
 0x744   : > { %3063 = shalt.err (!%p3060_p0)
}
 0x745   : > { %s3104_s29 = smov 256   ;;  %s3105_s21 = smov 16  }
 0x746   : > { %2972 = dma.vmem_to_hbm [thread:$0]  (%p3234_p5), %s4011_s30, 4864, %s4009_s26, %s4025_s19, %s3104_s29, %s3104_s29, %s3105_s21  }
 0x747 PF: > { %s4101_s0 = sld [smem:[#allocation5_spill]]  ;;  %p2978_p1 = scmp.ge.s32.totalorder %s3098_s27, 2 }
 0x749   : > { %p2975_p2 = pnand %p2978_p1, %p3238_p6 }
 0x74d   : > { %s2500_s24 = sand.u32 1, %s4101_s0  }
 0x74e   : > { %s2501_s22 = scalar_lea.sflag [#allocation3], %s2500_s24 }
 0x74f   : > { %3081 = dma.done.wait (!%p2975_p2), %s2501_s22, 4864  }
 0x750   : > { %3083 = vsyncadd (!%p2975_p2), %s2501_s22, 4294962432  ;;  %s4103_s27 = sld [smem:[#allocation7_spill]]  ;;  %s4104_s18 = sld [smem:[#allocation6_spill]] }
 0x751   : > { %s4105_s26 = sld [smem:[#allocation8_spill]]  ;;  %s4106_s24 = smov %s3090_s25 }
 0x756   : > { %p27_p3 = scmp.ge.s32.totalorder %s4103_s27, 6   ;;  %s4107_s25 = smov %s4104_s18 }
 0x758   :  { %29 = sbr.rel (!%p27_p3) target bundleno = 6 (0x6), region = 123 }
 0x75f   :  { %2506 = vsyncpa [#allocation3], 1 }
 0x760   :  { %2508 = vsyncpa [#allocation3 + $0x1], 1 }

</bundles_post_ra>
